<compile_context>
chip_gen: v7x
topology: tpu7x:2x2x1
jax: 0.10.0
libtpu: 0.0.40
codegen_flags: <defaults>
</compile_context>

<pallas_src>
import jax
import jax.numpy as jnp
import numpy as np
from jax import lax
from jax.experimental import pallas as pl
from jax.experimental.pallas import tpu as pltpu

_EPS = 1e-5


# ------------------------------- fused kernel -------------------------------


def _make_filter_kernel(C, H, W, n_blocks, lpad):
    """Builds the fused Filter kernel for a fixed (C, H, W)."""
    Wp, Hp = W + 2, H + 2
    P = Hp * Wp                      # flattened padded pixel count
    L = (H - 1) * Wp + W             # contiguous padded-coordinate window that
    p0 = Wp + 1                      # covers every interior pixel; first one.

    def kernel(x_ref, w_ref, t_ref, w1_ref, b1_ref, o_ref, xpad_ref, res_ref):
        # x_ref:    (1, C, H*W)      input image (flattened NCHW block)
        # w_ref:    (2*nb, C, 9C)    bf16 conv weights, BN scale pre-folded
        # t_ref:    (2*nb, C, 1)     folded conv-bias + BN shift
        # w1_ref:   (C, C) bf16      1x1 conv weight (Cout, Cin)
        # b1_ref:   (C, 1)           1x1 conv bias
        # o_ref:    (1, C, lpad)     output in lane-padded window layout
        # xpad_ref: VMEM (C, P) f32  zero-padded activation, spatially flat
        # res_ref:  VMEM (C, lpad)   f32 residual / final-conv operand (window)

        # ---- ring mask over the window: keep iff (j mod Wp) < W -----------
        # Built once per grid step from an iota via conditional subtraction
        # (avoids vector integer div/rem).
        r = lax.broadcasted_iota(jnp.int32, (C, L), 1)
        k = Wp
        while 2 * k <= L - 1:
            k *= 2
        while k >= Wp:
            r = jnp.where(r >= k, r - k, r)
            k //= 2
        ring_mask = r < W            # True at real pixels, False at ring cols

        # ---- in-kernel zero padding ----------------------------------------
        # Full (C, P) zero is only ~3 vector stores at this size; ring-only
        # zeroing would need many more masked stores, so keep the full clear.
        xpad_ref[...] = jnp.zeros((C, P), jnp.float32)
        for y in range(H):
            xpad_ref[:, pl.ds((y + 1) * Wp + 1, W)] = \
                x_ref[0, :, pl.ds(y * W, W)]

        # Residual scratch in window layout; tail columns (>= L) stay zero so
        # the final 1x1 matmul operand is finite everywhere.
        res_ref[...] = jnp.zeros((C, lpad), jnp.float32)
        res_ref[:, pl.ds(0, L)] = xpad_ref[:, pl.ds(p0, L)]

        def conv3x3_bn_relu(layer):
            # Cast the padded activation to bf16 ONCE, then slice the 9 taps
            # from the casted value; one im2col matmul per conv layer.
            src = xpad_ref[...].astype(jnp.bfloat16)            # (C, P)
            taps = [src[:, ky * Wp + kx: ky * Wp + kx + L]
                    for ky in range(3) for kx in range(3)]
            patches = jnp.concatenate(taps, axis=0)             # (9C, L) bf16
            y = jnp.dot(w_ref[layer], patches,
                        preferred_element_type=jnp.float32)     # (C, L) f32
            return jnp.maximum(y + t_ref[layer], 0.0)           # shift + ReLU

        layer = 0
        for b in range(n_blocks):                                # 3 ResBlocks
            y = conv3x3_bn_relu(layer)
            layer += 1
            # Masked store: ring columns are never written -> stay exactly 0.
            pltpu.store(xpad_ref.at[:, pl.ds(p0, L)], y, mask=ring_mask)
            y = conv3x3_bn_relu(layer)
            layer += 1
            new = y + res_ref[:, pl.ds(0, L)]                    # f32 residual
            res_ref[:, pl.ds(0, L)] = new                        # next residual
            if b + 1 < n_blocks:                                 # last block's
                pltpu.store(xpad_ref.at[:, pl.ds(p0, L)], new,   # pad image is
                            mask=ring_mask)                      # never reused

        # ---- final 1x1 conv on the lane-padded window layout ---------------
        act = res_ref[...].astype(jnp.bfloat16)                  # (C, lpad)
        out = jnp.dot(w1_ref[...], act,
                      preferred_element_type=jnp.float32) + b1_ref[...]
        o_ref[...] = out[None, :, :].astype(o_ref.dtype)         # unmasked vst

    return kernel, P, L


# --------------------------- parameter setup --------------------------------


def init_params(key, C):
    """Deterministic synthetic parameters (raw, PyTorch-like)."""
    params = {"blocks": []}
    for _ in range(3):
        block = []
        for _ in range(2):
            key, kw, kb, kg, kbe, km, kv = jax.random.split(key, 7)
            block.append(dict(
                w=jax.random.normal(kw, (3, 3, C, C), jnp.float32) * 0.1,  # HWIO
                b=jax.random.normal(kb, (C,), jnp.float32) * 0.1,
                gamma=jax.random.uniform(kg, (C,), jnp.float32, 0.5, 1.5),
                beta=jax.random.normal(kbe, (C,), jnp.float32) * 0.1,
                mean=jax.random.normal(km, (C,), jnp.float32) * 0.1,
                var=jax.random.uniform(kv, (C,), jnp.float32, 0.5, 1.5),
            ))
        params["blocks"].append(block)
    key, kw, kb = jax.random.split(key, 3)
    params["scale_w"] = jax.random.normal(kw, (C, C), jnp.float32) * 0.1
    params["scale_b"] = jax.random.normal(kb, (C,), jnp.float32) * 0.1
    return params


def _fold_conv_bn(layer):
    """Fold conv bias + eval-mode BN into (scale*W (Cout,9Cin), shift)."""
    C = layer["gamma"].shape[0]
    inv = 1.0 / jnp.sqrt(layer["var"] + _EPS)
    scale = layer["gamma"] * inv                                  # per-Cout
    shift = (layer["b"] - layer["mean"]) * scale + layer["beta"]
    w9 = layer["w"].reshape(9, C, C)                              # (tap,Cin,Cout)
    w_mat = jnp.transpose(w9, (2, 0, 1)).reshape(C, 9 * C)        # (Cout,tap*Cin)
    w_mat = w_mat * scale[:, None]                                # fold BN scale
    return w_mat, shift.reshape(C, 1)


# ------------------------------ full forward --------------------------------


@jax.jit
def filter_forward(x_nchw, params):
    """PyTorch-equivalent Filter.forward (eval mode). Input/output are NCHW."""
    x = x_nchw.astype(jnp.float32)
    N, C, H, W = x.shape
    HW = H * W
    Wp = W + 2
    n_blocks = len(params["blocks"])
    n_conv = 2 * n_blocks
    lpad = ((H * Wp + 127) // 128) * 128          # lane-dense output width

    folded = [_fold_conv_bn(l) for blk in params["blocks"] for l in blk]
    conv_w = jnp.stack([f[0] for f in folded]).astype(jnp.bfloat16)  # (6,C,9C)
    conv_t = jnp.stack([f[1] for f in folded])                       # (6,C,1)
    w1 = jnp.transpose(params["scale_w"]).astype(jnp.bfloat16)       # (Cout,Cin)
    b1 = params["scale_b"].reshape(C, 1)

    kernel, P, L = _make_filter_kernel(C, H, W, n_blocks, lpad)

    out_win = pl.pallas_call(
        kernel,
        out_shape=jax.ShapeDtypeStruct((N, C, lpad), jnp.float32),
        grid=(N,),
        in_specs=[
            pl.BlockSpec((1, C, HW), lambda n: (n, 0, 0)),
            pl.BlockSpec((n_conv, C, 9 * C), lambda n: (0, 0, 0)),
            pl.BlockSpec((n_conv, C, 1), lambda n: (0, 0, 0)),
            pl.BlockSpec((C, C), lambda n: (0, 0)),
            pl.BlockSpec((C, 1), lambda n: (0, 0)),
        ],
        out_specs=pl.BlockSpec((1, C, lpad), lambda n: (n, 0, 0)),
        scratch_shapes=[pltpu.VMEM((C, P), jnp.float32),
                        pltpu.VMEM((C, lpad), jnp.float32)],
        compiler_params=pltpu.CompilerParams(
            dimension_semantics=("parallel",)),
    )(x.reshape(N, C, HW), conv_w, conv_t, w1, b1)

    # Cheap XLA compaction: window layout (j = y*Wp + x) -> NCHW interior.
    out = out_win[:, :, :H * Wp].reshape(N, C, H, Wp)[:, :, :, :W]
    return out


# ----------------------------- pure-JAX reference ----------------------------


def _ref_conv3x3(x, w, b):
    y = lax.conv_general_dilated(
        x, w, window_strides=(1, 1), padding="SAME",
        dimension_numbers=("NHWC", "HWIO", "NHWC"),
        precision=lax.Precision.HIGHEST)
    return y + b


def _ref_bn(x, g, beta, mean, var):
    return (x - mean) / jnp.sqrt(var + _EPS) * g + beta


def ref_forward(x_nchw, params):
    x = jnp.transpose(x_nchw, (0, 2, 3, 1)).astype(jnp.float32)
    for block in params["blocks"]:
        res = x
        for layer in block:
            x = _ref_conv3x3(x, layer["w"], layer["b"])
            x = _ref_bn(x, layer["gamma"], layer["beta"], layer["mean"],
                        layer["var"])
            x = jnp.maximum(x, 0.0)
        x = x + res
    x = jnp.einsum("nhwc,cd->nhwd", x, params["scale_w"],
                   precision=lax.Precision.HIGHEST) + params["scale_b"]
    return jnp.transpose(x, (0, 3, 1, 2))


# ---------------------------------- main -------------------------------------


if __name__ == "__main__":
    key = jax.random.PRNGKey(0)
    k_params, k_x = jax.random.split(key)

    N, C, H, W = 2, 8, 16, 16
    params = init_params(k_params, C)
    x = jax.random.normal(k_x, (N, C, H, W), jnp.float32)  # PyTorch NCHW

    out = filter_forward(x, params)
    out = jax.block_until_ready(out)

    ref = jax.block_until_ready(ref_forward(x, params))
    # bf16 matmul operands (f32 accumulation) per perf review -> loose tol.
    np.testing.assert_allclose(np.asarray(out), np.asarray(ref),
                               rtol=5e-2, atol=5e-2)

    print("KERNEL_OK")
</pallas_src>

<mosaic_0001>
module attributes {stable_mosaic.version = 11 : i64} {
  func.func @kernel(%arg0: i32, %arg1: memref<1x8x256xf32, #tpu.memory_space<vmem>>, %arg2: memref<6x8x72xbf16, #tpu.memory_space<vmem>>, %arg3: memref<6x8x1xf32, #tpu.memory_space<vmem>>, %arg4: memref<8x8xbf16, #tpu.memory_space<vmem>>, %arg5: memref<8x1xf32, #tpu.memory_space<vmem>>, %arg6: memref<1x8x384xf32, #tpu.memory_space<vmem>>, %arg7: memref<8x324xf32, #tpu.memory_space<vmem>>, %arg8: memref<8x384xf32, #tpu.memory_space<vmem>>) attributes {dimension_semantics = [#tpu.dimension_semantics<parallel>], iteration_bounds = array<i64: 2>, scalar_prefetch = 0 : i64, scratch_operands = 2 : i64, tpu.core_type = #tpu.core_type<tc>, window_params = [{transform_indices = @transform_0, window_bounds = array<i64: 1, 8, 256>}, {pipeline_mode = #tpu.pipeline_mode<synchronous>, transform_indices = @transform_1, window_bounds = array<i64: 6, 8, 72>}, {pipeline_mode = #tpu.pipeline_mode<synchronous>, transform_indices = @transform_2, window_bounds = array<i64: 6, 8, 1>}, {pipeline_mode = #tpu.pipeline_mode<synchronous>, transform_indices = @transform_3, window_bounds = array<i64: 8, 8>}, {pipeline_mode = #tpu.pipeline_mode<synchronous>, transform_indices = @transform_4, window_bounds = array<i64: 8, 1>}, {transform_indices = @transform_5, window_bounds = array<i64: 1, 8, 384>}]} {
    %0 = tpu.iota {dimensions = array<i32: 1>} : vector<8x286xi32>
    %c144_i32 = arith.constant 144 : i32
    %1 = vector.broadcast %c144_i32 : i32 to vector<8x286xi32>
    %2 = arith.cmpi sge, %0, %1 : vector<8x286xi32>
    %c144_i32_0 = arith.constant 144 : i32
    %3 = vector.broadcast %c144_i32_0 : i32 to vector<8x286xi32>
    %4 = arith.subi %0, %3 : vector<8x286xi32>
    %5 = arith.select %2, %4, %0 : vector<8x286xi1>, vector<8x286xi32>
    %c72_i32 = arith.constant 72 : i32
    %6 = vector.broadcast %c72_i32 : i32 to vector<8x286xi32>
    %7 = arith.cmpi sge, %5, %6 : vector<8x286xi32>
    %c72_i32_1 = arith.constant 72 : i32
    %8 = vector.broadcast %c72_i32_1 : i32 to vector<8x286xi32>
    %9 = arith.subi %5, %8 : vector<8x286xi32>
    %10 = arith.select %7, %9, %5 : vector<8x286xi1>, vector<8x286xi32>
    %c36_i32 = arith.constant 36 : i32
    %11 = vector.broadcast %c36_i32 : i32 to vector<8x286xi32>
    %12 = arith.cmpi sge, %10, %11 : vector<8x286xi32>
    %c36_i32_2 = arith.constant 36 : i32
    %13 = vector.broadcast %c36_i32_2 : i32 to vector<8x286xi32>
    %14 = arith.subi %10, %13 : vector<8x286xi32>
    %15 = arith.select %12, %14, %10 : vector<8x286xi1>, vector<8x286xi32>
    %c18_i32 = arith.constant 18 : i32
    %16 = vector.broadcast %c18_i32 : i32 to vector<8x286xi32>
    %17 = arith.cmpi sge, %15, %16 : vector<8x286xi32>
    %c18_i32_3 = arith.constant 18 : i32
    %18 = vector.broadcast %c18_i32_3 : i32 to vector<8x286xi32>
    %19 = arith.subi %15, %18 : vector<8x286xi32>
    %20 = arith.select %17, %19, %15 : vector<8x286xi1>, vector<8x286xi32>
    %c16_i32 = arith.constant 16 : i32
    %21 = vector.broadcast %c16_i32 : i32 to vector<8x286xi32>
    %22 = arith.cmpi slt, %20, %21 : vector<8x286xi32>
    %cst = arith.constant 0.000000e+00 : f32
    %23 = vector.broadcast %cst : f32 to vector<8x324xf32>
    %c0 = arith.constant 0 : index
    %c0_4 = arith.constant 0 : index
    %24 = vector.load %arg7[%c0, %c0_4] : memref<8x324xf32, #tpu.memory_space<vmem>>, vector<8x324xf32>
    tpu.vector_store %arg7[%c0, %c0_4], %23 {strides = array<i32>} : memref<8x324xf32, #tpu.memory_space<vmem>>, vector<8x324xf32>,
    %c0_5 = arith.constant 0 : index
    %c0_6 = arith.constant 0 : index
    %c0_7 = arith.constant 0 : index
    %25 = vector.load %arg1[%c0_5, %c0_6, %c0_7] : memref<1x8x256xf32, #tpu.memory_space<vmem>>, vector<1x8x16xf32>
    %26 = vector.shape_cast %25 : vector<1x8x16xf32> to vector<8x16xf32>
    %c0_8 = arith.constant 0 : index
    %c19 = arith.constant 19 : index
    %27 = vector.load %arg7[%c0_8, %c19] : memref<8x324xf32, #tpu.memory_space<vmem>>, vector<8x16xf32>
    tpu.vector_store %arg7[%c0_8, %c19], %26 {strides = array<i32>} : memref<8x324xf32, #tpu.memory_space<vmem>>, vector<8x16xf32>,
    %c0_9 = arith.constant 0 : index
    %c0_10 = arith.constant 0 : index
    %c16 = arith.constant 16 : index
    %28 = vector.load %arg1[%c0_9, %c0_10, %c16] : memref<1x8x256xf32, #tpu.memory_space<vmem>>, vector<1x8x16xf32>
    %29 = vector.shape_cast %28 : vector<1x8x16xf32> to vector<8x16xf32>
    %c0_11 = arith.constant 0 : index
    %c37 = arith.constant 37 : index
    %30 = vector.load %arg7[%c0_11, %c37] : memref<8x324xf32, #tpu.memory_space<vmem>>, vector<8x16xf32>
    tpu.vector_store %arg7[%c0_11, %c37], %29 {strides = array<i32>} : memref<8x324xf32, #tpu.memory_space<vmem>>, vector<8x16xf32>,
    %c0_12 = arith.constant 0 : index
    %c0_13 = arith.constant 0 : index
    %c32 = arith.constant 32 : index
    %31 = vector.load %arg1[%c0_12, %c0_13, %c32] : memref<1x8x256xf32, #tpu.memory_space<vmem>>, vector<1x8x16xf32>
    %32 = vector.shape_cast %31 : vector<1x8x16xf32> to vector<8x16xf32>
    %c0_14 = arith.constant 0 : index
    %c55 = arith.constant 55 : index
    %33 = vector.load %arg7[%c0_14, %c55] : memref<8x324xf32, #tpu.memory_space<vmem>>, vector<8x16xf32>
    tpu.vector_store %arg7[%c0_14, %c55], %32 {strides = array<i32>} : memref<8x324xf32, #tpu.memory_space<vmem>>, vector<8x16xf32>,
    %c0_15 = arith.constant 0 : index
    %c0_16 = arith.constant 0 : index
    %c48 = arith.constant 48 : index
    %34 = vector.load %arg1[%c0_15, %c0_16, %c48] : memref<1x8x256xf32, #tpu.memory_space<vmem>>, vector<1x8x16xf32>
    %35 = vector.shape_cast %34 : vector<1x8x16xf32> to vector<8x16xf32>
    %c0_17 = arith.constant 0 : index
    %c73 = arith.constant 73 : index
    %36 = vector.load %arg7[%c0_17, %c73] : memref<8x324xf32, #tpu.memory_space<vmem>>, vector<8x16xf32>
    tpu.vector_store %arg7[%c0_17, %c73], %35 {strides = array<i32>} : memref<8x324xf32, #tpu.memory_space<vmem>>, vector<8x16xf32>,
    %c0_18 = arith.constant 0 : index
    %c0_19 = arith.constant 0 : index
    %c64 = arith.constant 64 : index
    %37 = vector.load %arg1[%c0_18, %c0_19, %c64] : memref<1x8x256xf32, #tpu.memory_space<vmem>>, vector<1x8x16xf32>
    %38 = vector.shape_cast %37 : vector<1x8x16xf32> to vector<8x16xf32>
    %c0_20 = arith.constant 0 : index
    %c91 = arith.constant 91 : index
    %39 = vector.load %arg7[%c0_20, %c91] : memref<8x324xf32, #tpu.memory_space<vmem>>, vector<8x16xf32>
    tpu.vector_store %arg7[%c0_20, %c91], %38 {strides = array<i32>} : memref<8x324xf32, #tpu.memory_space<vmem>>, vector<8x16xf32>,
    %c0_21 = arith.constant 0 : index
    %c0_22 = arith.constant 0 : index
    %c80 = arith.constant 80 : index
    %40 = vector.load %arg1[%c0_21, %c0_22, %c80] : memref<1x8x256xf32, #tpu.memory_space<vmem>>, vector<1x8x16xf32>
    %41 = vector.shape_cast %40 : vector<1x8x16xf32> to vector<8x16xf32>
    %c0_23 = arith.constant 0 : index
    %c109 = arith.constant 109 : index
    %42 = vector.load %arg7[%c0_23, %c109] : memref<8x324xf32, #tpu.memory_space<vmem>>, vector<8x16xf32>
    tpu.vector_store %arg7[%c0_23, %c109], %41 {strides = array<i32>} : memref<8x324xf32, #tpu.memory_space<vmem>>, vector<8x16xf32>,
    %c0_24 = arith.constant 0 : index
    %c0_25 = arith.constant 0 : index
    %c96 = arith.constant 96 : index
    %43 = vector.load %arg1[%c0_24, %c0_25, %c96] : memref<1x8x256xf32, #tpu.memory_space<vmem>>, vector<1x8x16xf32>
    %44 = vector.shape_cast %43 : vector<1x8x16xf32> to vector<8x16xf32>
    %c0_26 = arith.constant 0 : index
    %c127 = arith.constant 127 : index
    %45 = vector.load %arg7[%c0_26, %c127] : memref<8x324xf32, #tpu.memory_space<vmem>>, vector<8x16xf32>
    tpu.vector_store %arg7[%c0_26, %c127], %44 {strides = array<i32>} : memref<8x324xf32, #tpu.memory_space<vmem>>, vector<8x16xf32>,
    %c0_27 = arith.constant 0 : index
    %c0_28 = arith.constant 0 : index
    %c112 = arith.constant 112 : index
    %46 = vector.load %arg1[%c0_27, %c0_28, %c112] : memref<1x8x256xf32, #tpu.memory_space<vmem>>, vector<1x8x16xf32>
    %47 = vector.shape_cast %46 : vector<1x8x16xf32> to vector<8x16xf32>
    %c0_29 = arith.constant 0 : index
    %c145 = arith.constant 145 : index
    %48 = vector.load %arg7[%c0_29, %c145] : memref<8x324xf32, #tpu.memory_space<vmem>>, vector<8x16xf32>
    tpu.vector_store %arg7[%c0_29, %c145], %47 {strides = array<i32>} : memref<8x324xf32, #tpu.memory_space<vmem>>, vector<8x16xf32>,
    %c0_30 = arith.constant 0 : index
    %c0_31 = arith.constant 0 : index
    %c128 = arith.constant 128 : index
    %49 = vector.load %arg1[%c0_30, %c0_31, %c128] : memref<1x8x256xf32, #tpu.memory_space<vmem>>, vector<1x8x16xf32>
    %50 = vector.shape_cast %49 : vector<1x8x16xf32> to vector<8x16xf32>
    %c0_32 = arith.constant 0 : index
    %c163 = arith.constant 163 : index
    %51 = vector.load %arg7[%c0_32, %c163] : memref<8x324xf32, #tpu.memory_space<vmem>>, vector<8x16xf32>
    tpu.vector_store %arg7[%c0_32, %c163], %50 {strides = array<i32>} : memref<8x324xf32, #tpu.memory_space<vmem>>, vector<8x16xf32>,
    %c0_33 = arith.constant 0 : index
    %c0_34 = arith.constant 0 : index
    %c144 = arith.constant 144 : index
    %52 = vector.load %arg1[%c0_33, %c0_34, %c144] : memref<1x8x256xf32, #tpu.memory_space<vmem>>, vector<1x8x16xf32>
    %53 = vector.shape_cast %52 : vector<1x8x16xf32> to vector<8x16xf32>
    %c0_35 = arith.constant 0 : index
    %c181 = arith.constant 181 : index
    %54 = vector.load %arg7[%c0_35, %c181] : memref<8x324xf32, #tpu.memory_space<vmem>>, vector<8x16xf32>
    tpu.vector_store %arg7[%c0_35, %c181], %53 {strides = array<i32>} : memref<8x324xf32, #tpu.memory_space<vmem>>, vector<8x16xf32>,
    %c0_36 = arith.constant 0 : index
    %c0_37 = arith.constant 0 : index
    %c160 = arith.constant 160 : index
    %55 = vector.load %arg1[%c0_36, %c0_37, %c160] : memref<1x8x256xf32, #tpu.memory_space<vmem>>, vector<1x8x16xf32>
    %56 = vector.shape_cast %55 : vector<1x8x16xf32> to vector<8x16xf32>
    %c0_38 = arith.constant 0 : index
    %c199 = arith.constant 199 : index
    %57 = vector.load %arg7[%c0_38, %c199] : memref<8x324xf32, #tpu.memory_space<vmem>>, vector<8x16xf32>
    tpu.vector_store %arg7[%c0_38, %c199], %56 {strides = array<i32>} : memref<8x324xf32, #tpu.memory_space<vmem>>, vector<8x16xf32>,
    %c0_39 = arith.constant 0 : index
    %c0_40 = arith.constant 0 : index
    %c176 = arith.constant 176 : index
    %58 = vector.load %arg1[%c0_39, %c0_40, %c176] : memref<1x8x256xf32, #tpu.memory_space<vmem>>, vector<1x8x16xf32>
    %59 = vector.shape_cast %58 : vector<1x8x16xf32> to vector<8x16xf32>
    %c0_41 = arith.constant 0 : index
    %c217 = arith.constant 217 : index
    %60 = vector.load %arg7[%c0_41, %c217] : memref<8x324xf32, #tpu.memory_space<vmem>>, vector<8x16xf32>
    tpu.vector_store %arg7[%c0_41, %c217], %59 {strides = array<i32>} : memref<8x324xf32, #tpu.memory_space<vmem>>, vector<8x16xf32>,
    %c0_42 = arith.constant 0 : index
    %c0_43 = arith.constant 0 : index
    %c192 = arith.constant 192 : index
    %61 = vector.load %arg1[%c0_42, %c0_43, %c192] : memref<1x8x256xf32, #tpu.memory_space<vmem>>, vector<1x8x16xf32>
    %62 = vector.shape_cast %61 : vector<1x8x16xf32> to vector<8x16xf32>
    %c0_44 = arith.constant 0 : index
    %c235 = arith.constant 235 : index
    %63 = vector.load %arg7[%c0_44, %c235] : memref<8x324xf32, #tpu.memory_space<vmem>>, vector<8x16xf32>
    tpu.vector_store %arg7[%c0_44, %c235], %62 {strides = array<i32>} : memref<8x324xf32, #tpu.memory_space<vmem>>, vector<8x16xf32>,
    %c0_45 = arith.constant 0 : index
    %c0_46 = arith.constant 0 : index
    %c208 = arith.constant 208 : index
    %64 = vector.load %arg1[%c0_45, %c0_46, %c208] : memref<1x8x256xf32, #tpu.memory_space<vmem>>, vector<1x8x16xf32>
    %65 = vector.shape_cast %64 : vector<1x8x16xf32> to vector<8x16xf32>
    %c0_47 = arith.constant 0 : index
    %c253 = arith.constant 253 : index
    %66 = vector.load %arg7[%c0_47, %c253] : memref<8x324xf32, #tpu.memory_space<vmem>>, vector<8x16xf32>
    tpu.vector_store %arg7[%c0_47, %c253], %65 {strides = array<i32>} : memref<8x324xf32, #tpu.memory_space<vmem>>, vector<8x16xf32>,
    %c0_48 = arith.constant 0 : index
    %c0_49 = arith.constant 0 : index
    %c224 = arith.constant 224 : index
    %67 = vector.load %arg1[%c0_48, %c0_49, %c224] : memref<1x8x256xf32, #tpu.memory_space<vmem>>, vector<1x8x16xf32>
    %68 = vector.shape_cast %67 : vector<1x8x16xf32> to vector<8x16xf32>
    %c0_50 = arith.constant 0 : index
    %c271 = arith.constant 271 : index
    %69 = vector.load %arg7[%c0_50, %c271] : memref<8x324xf32, #tpu.memory_space<vmem>>, vector<8x16xf32>
    tpu.vector_store %arg7[%c0_50, %c271], %68 {strides = array<i32>} : memref<8x324xf32, #tpu.memory_space<vmem>>, vector<8x16xf32>,
    %c0_51 = arith.constant 0 : index
    %c0_52 = arith.constant 0 : index
    %c240 = arith.constant 240 : index
    %70 = vector.load %arg1[%c0_51, %c0_52, %c240] : memref<1x8x256xf32, #tpu.memory_space<vmem>>, vector<1x8x16xf32>
    %71 = vector.shape_cast %70 : vector<1x8x16xf32> to vector<8x16xf32>
    %c0_53 = arith.constant 0 : index
    %c289 = arith.constant 289 : index
    %72 = vector.load %arg7[%c0_53, %c289] : memref<8x324xf32, #tpu.memory_space<vmem>>, vector<8x16xf32>
    tpu.vector_store %arg7[%c0_53, %c289], %71 {strides = array<i32>} : memref<8x324xf32, #tpu.memory_space<vmem>>, vector<8x16xf32>,
    %cst_54 = arith.constant 0.000000e+00 : f32
    %73 = vector.broadcast %cst_54 : f32 to vector<8x384xf32>
    %c0_55 = arith.constant 0 : index
    %c0_56 = arith.constant 0 : index
    %74 = vector.load %arg8[%c0_55, %c0_56] : memref<8x384xf32, #tpu.memory_space<vmem>>, vector<8x384xf32>
    tpu.vector_store %arg8[%c0_55, %c0_56], %73 {strides = array<i32>} : memref<8x384xf32, #tpu.memory_space<vmem>>, vector<8x384xf32>,
    %c0_57 = arith.constant 0 : index
    %c19_58 = arith.constant 19 : index
    %75 = vector.load %arg7[%c0_57, %c19_58] : memref<8x324xf32, #tpu.memory_space<vmem>>, vector<8x286xf32>
    %c0_59 = arith.constant 0 : index
    %c0_60 = arith.constant 0 : index
    %76 = vector.load %arg8[%c0_59, %c0_60] : memref<8x384xf32, #tpu.memory_space<vmem>>, vector<8x286xf32>
    tpu.vector_store %arg8[%c0_59, %c0_60], %75 {strides = array<i32>} : memref<8x384xf32, #tpu.memory_space<vmem>>, vector<8x286xf32>,
    %c0_61 = arith.constant 0 : index
    %c0_62 = arith.constant 0 : index
    %77 = vector.load %arg7[%c0_61, %c0_62] : memref<8x324xf32, #tpu.memory_space<vmem>>, vector<8x324xf32>
    %78 = arith.truncf %77 : vector<8x324xf32> to vector<8x324xbf16>
    %79 = vector.extract_strided_slice %78 {offsets = [0, 0], sizes = [8, 286], strides = [1, 1]} : vector<8x324xbf16> to vector<8x286xbf16>
    %80 = vector.extract_strided_slice %78 {offsets = [0, 1], sizes = [8, 286], strides = [1, 1]} : vector<8x324xbf16> to vector<8x286xbf16>
    %81 = vector.extract_strided_slice %78 {offsets = [0, 2], sizes = [8, 286], strides = [1, 1]} : vector<8x324xbf16> to vector<8x286xbf16>
    %82 = vector.extract_strided_slice %78 {offsets = [0, 18], sizes = [8, 286], strides = [1, 1]} : vector<8x324xbf16> to vector<8x286xbf16>
    %83 = vector.extract_strided_slice %78 {offsets = [0, 19], sizes = [8, 286], strides = [1, 1]} : vector<8x324xbf16> to vector<8x286xbf16>
    %84 = vector.extract_strided_slice %78 {offsets = [0, 20], sizes = [8, 286], strides = [1, 1]} : vector<8x324xbf16> to vector<8x286xbf16>
    %85 = vector.extract_strided_slice %78 {offsets = [0, 36], sizes = [8, 286], strides = [1, 1]} : vector<8x324xbf16> to vector<8x286xbf16>
    %86 = vector.extract_strided_slice %78 {offsets = [0, 37], sizes = [8, 286], strides = [1, 1]} : vector<8x324xbf16> to vector<8x286xbf16>
    %87 = vector.extract_strided_slice %78 {offsets = [0, 38], sizes = [8, 286], strides = [1, 1]} : vector<8x324xbf16> to vector<8x286xbf16>
    %88 = tpu.concatenate %79, %80, %81, %82, %83, %84, %85, %86, %87 in 0 : vector<8x286xbf16>, vector<8x286xbf16>, vector<8x286xbf16>, vector<8x286xbf16>, vector<8x286xbf16>, vector<8x286xbf16>, vector<8x286xbf16>, vector<8x286xbf16>, vector<8x286xbf16> -> vector<72x286xbf16>
    %c0_63 = arith.constant 0 : index
    %c0_64 = arith.constant 0 : index
    %c0_65 = arith.constant 0 : index
    %89 = vector.load %arg2[%c0_63, %c0_64, %c0_65] : memref<6x8x72xbf16, #tpu.memory_space<vmem>>, vector<1x8x72xbf16>
    %90 = vector.shape_cast %89 : vector<1x8x72xbf16> to vector<8x72xbf16>
    %cst_66 = arith.constant dense<0.000000e+00> : vector<8x286xf32>
    %91 = tpu.matmul %90, %88, %cst_66 {dimension_numbers = #tpu.dot_dimension_numbers<[1], [0], [0], [1], [0, 0, 1, 1], [], []>} : vector<8x72xbf16>, vector<72x286xbf16>, vector<8x286xf32> -> vector<8x286xf32>
    %c0_67 = arith.constant 0 : index
    %c0_68 = arith.constant 0 : index
    %c0_69 = arith.constant 0 : index
    %92 = vector.load %arg3[%c0_67, %c0_68, %c0_69] : memref<6x8x1xf32, #tpu.memory_space<vmem>>, vector<1x8x1xf32>
    %93 = vector.shape_cast %92 : vector<1x8x1xf32> to vector<8x1xf32>
    %94 = vector.broadcast %93 : vector<8x1xf32> to vector<8x286xf32>
    %95 = arith.addf %91, %94 : vector<8x286xf32>
    %cst_70 = arith.constant 0.000000e+00 : f32
    %96 = vector.broadcast %cst_70 : f32 to vector<8x286xf32>
    %97 = arith.maximumf %95, %96 : vector<8x286xf32>
    %c0_71 = arith.constant 0 : index
    %c19_72 = arith.constant 19 : index
    %98 = vector.load %arg7[%c0_71, %c19_72] : memref<8x324xf32, #tpu.memory_space<vmem>>, vector<8x286xf32>
    tpu.vector_store %arg7[%c0_71, %c19_72], %97 masked %22 {strides = array<i32>} : memref<8x324xf32, #tpu.memory_space<vmem>>, vector<8x286xf32>, vector<8x286xi1>
    %c0_73 = arith.constant 0 : index
    %c0_74 = arith.constant 0 : index
    %99 = vector.load %arg7[%c0_73, %c0_74] : memref<8x324xf32, #tpu.memory_space<vmem>>, vector<8x324xf32>
    %100 = arith.truncf %99 : vector<8x324xf32> to vector<8x324xbf16>
    %101 = vector.extract_strided_slice %100 {offsets = [0, 0], sizes = [8, 286], strides = [1, 1]} : vector<8x324xbf16> to vector<8x286xbf16>
    %102 = vector.extract_strided_slice %100 {offsets = [0, 1], sizes = [8, 286], strides = [1, 1]} : vector<8x324xbf16> to vector<8x286xbf16>
    %103 = vector.extract_strided_slice %100 {offsets = [0, 2], sizes = [8, 286], strides = [1, 1]} : vector<8x324xbf16> to vector<8x286xbf16>
    %104 = vector.extract_strided_slice %100 {offsets = [0, 18], sizes = [8, 286], strides = [1, 1]} : vector<8x324xbf16> to vector<8x286xbf16>
    %105 = vector.extract_strided_slice %100 {offsets = [0, 19], sizes = [8, 286], strides = [1, 1]} : vector<8x324xbf16> to vector<8x286xbf16>
    %106 = vector.extract_strided_slice %100 {offsets = [0, 20], sizes = [8, 286], strides = [1, 1]} : vector<8x324xbf16> to vector<8x286xbf16>
    %107 = vector.extract_strided_slice %100 {offsets = [0, 36], sizes = [8, 286], strides = [1, 1]} : vector<8x324xbf16> to vector<8x286xbf16>
    %108 = vector.extract_strided_slice %100 {offsets = [0, 37], sizes = [8, 286], strides = [1, 1]} : vector<8x324xbf16> to vector<8x286xbf16>
    %109 = vector.extract_strided_slice %100 {offsets = [0, 38], sizes = [8, 286], strides = [1, 1]} : vector<8x324xbf16> to vector<8x286xbf16>
    %110 = tpu.concatenate %101, %102, %103, %104, %105, %106, %107, %108, %109 in 0 : vector<8x286xbf16>, vector<8x286xbf16>, vector<8x286xbf16>, vector<8x286xbf16>, vector<8x286xbf16>, vector<8x286xbf16>, vector<8x286xbf16>, vector<8x286xbf16>, vector<8x286xbf16> -> vector<72x286xbf16>
    %c1 = arith.constant 1 : index
    %c0_75 = arith.constant 0 : index
    %c0_76 = arith.constant 0 : index
    %111 = vector.load %arg2[%c1, %c0_75, %c0_76] : memref<6x8x72xbf16, #tpu.memory_space<vmem>>, vector<1x8x72xbf16>
    %112 = vector.shape_cast %111 : vector<1x8x72xbf16> to vector<8x72xbf16>
    %cst_77 = arith.constant dense<0.000000e+00> : vector<8x286xf32>
    %113 = tpu.matmul %112, %110, %cst_77 {dimension_numbers = #tpu.dot_dimension_numbers<[1], [0], [0], [1], [0, 0, 1, 1], [], []>} : vector<8x72xbf16>, vector<72x286xbf16>, vector<8x286xf32> -> vector<8x286xf32>
    %c1_78 = arith.constant 1 : index
    %c0_79 = arith.constant 0 : index
    %c0_80 = arith.constant 0 : index
    %114 = vector.load %arg3[%c1_78, %c0_79, %c0_80] : memref<6x8x1xf32, #tpu.memory_space<vmem>>, vector<1x8x1xf32>
    %115 = vector.shape_cast %114 : vector<1x8x1xf32> to vector<8x1xf32>
    %116 = vector.broadcast %115 : vector<8x1xf32> to vector<8x286xf32>
    %117 = arith.addf %113, %116 : vector<8x286xf32>
    %cst_81 = arith.constant 0.000000e+00 : f32
    %118 = vector.broadcast %cst_81 : f32 to vector<8x286xf32>
    %119 = arith.maximumf %117, %118 : vector<8x286xf32>
    %c0_82 = arith.constant 0 : index
    %c0_83 = arith.constant 0 : index
    %120 = vector.load %arg8[%c0_82, %c0_83] : memref<8x384xf32, #tpu.memory_space<vmem>>, vector<8x286xf32>
    %121 = arith.addf %119, %120 : vector<8x286xf32>
    %c0_84 = arith.constant 0 : index
    %c0_85 = arith.constant 0 : index
    %122 = vector.load %arg8[%c0_84, %c0_85] : memref<8x384xf32, #tpu.memory_space<vmem>>, vector<8x286xf32>
    tpu.vector_store %arg8[%c0_84, %c0_85], %121 {strides = array<i32>} : memref<8x384xf32, #tpu.memory_space<vmem>>, vector<8x286xf32>,
    %c0_86 = arith.constant 0 : index
    %c19_87 = arith.constant 19 : index
    %123 = vector.load %arg7[%c0_86, %c19_87] : memref<8x324xf32, #tpu.memory_space<vmem>>, vector<8x286xf32>
    tpu.vector_store %arg7[%c0_86, %c19_87], %121 masked %22 {strides = array<i32>} : memref<8x324xf32, #tpu.memory_space<vmem>>, vector<8x286xf32>, vector<8x286xi1>
    %c0_88 = arith.constant 0 : index
    %c0_89 = arith.constant 0 : index
    %124 = vector.load %arg7[%c0_88, %c0_89] : memref<8x324xf32, #tpu.memory_space<vmem>>, vector<8x324xf32>
    %125 = arith.truncf %124 : vector<8x324xf32> to vector<8x324xbf16>
    %126 = vector.extract_strided_slice %125 {offsets = [0, 0], sizes = [8, 286], strides = [1, 1]} : vector<8x324xbf16> to vector<8x286xbf16>
    %127 = vector.extract_strided_slice %125 {offsets = [0, 1], sizes = [8, 286], strides = [1, 1]} : vector<8x324xbf16> to vector<8x286xbf16>
    %128 = vector.extract_strided_slice %125 {offsets = [0, 2], sizes = [8, 286], strides = [1, 1]} : vector<8x324xbf16> to vector<8x286xbf16>
    %129 = vector.extract_strided_slice %125 {offsets = [0, 18], sizes = [8, 286], strides = [1, 1]} : vector<8x324xbf16> to vector<8x286xbf16>
    %130 = vector.extract_strided_slice %125 {offsets = [0, 19], sizes = [8, 286], strides = [1, 1]} : vector<8x324xbf16> to vector<8x286xbf16>
    %131 = vector.extract_strided_slice %125 {offsets = [0, 20], sizes = [8, 286], strides = [1, 1]} : vector<8x324xbf16> to vector<8x286xbf16>
    %132 = vector.extract_strided_slice %125 {offsets = [0, 36], sizes = [8, 286], strides = [1, 1]} : vector<8x324xbf16> to vector<8x286xbf16>
    %133 = vector.extract_strided_slice %125 {offsets = [0, 37], sizes = [8, 286], strides = [1, 1]} : vector<8x324xbf16> to vector<8x286xbf16>
    %134 = vector.extract_strided_slice %125 {offsets = [0, 38], sizes = [8, 286], strides = [1, 1]} : vector<8x324xbf16> to vector<8x286xbf16>
    %135 = tpu.concatenate %126, %127, %128, %129, %130, %131, %132, %133, %134 in 0 : vector<8x286xbf16>, vector<8x286xbf16>, vector<8x286xbf16>, vector<8x286xbf16>, vector<8x286xbf16>, vector<8x286xbf16>, vector<8x286xbf16>, vector<8x286xbf16>, vector<8x286xbf16> -> vector<72x286xbf16>
    %c2 = arith.constant 2 : index
    %c0_90 = arith.constant 0 : index
    %c0_91 = arith.constant 0 : index
    %136 = vector.load %arg2[%c2, %c0_90, %c0_91] : memref<6x8x72xbf16, #tpu.memory_space<vmem>>, vector<1x8x72xbf16>
    %137 = vector.shape_cast %136 : vector<1x8x72xbf16> to vector<8x72xbf16>
    %cst_92 = arith.constant dense<0.000000e+00> : vector<8x286xf32>
    %138 = tpu.matmul %137, %135, %cst_92 {dimension_numbers = #tpu.dot_dimension_numbers<[1], [0], [0], [1], [0, 0, 1, 1], [], []>} : vector<8x72xbf16>, vector<72x286xbf16>, vector<8x286xf32> -> vector<8x286xf32>
    %c2_93 = arith.constant 2 : index
    %c0_94 = arith.constant 0 : index
    %c0_95 = arith.constant 0 : index
    %139 = vector.load %arg3[%c2_93, %c0_94, %c0_95] : memref<6x8x1xf32, #tpu.memory_space<vmem>>, vector<1x8x1xf32>
    %140 = vector.shape_cast %139 : vector<1x8x1xf32> to vector<8x1xf32>
    %141 = vector.broadcast %140 : vector<8x1xf32> to vector<8x286xf32>
    %142 = arith.addf %138, %141 : vector<8x286xf32>
    %cst_96 = arith.constant 0.000000e+00 : f32
    %143 = vector.broadcast %cst_96 : f32 to vector<8x286xf32>
    %144 = arith.maximumf %142, %143 : vector<8x286xf32>
    %c0_97 = arith.constant 0 : index
    %c19_98 = arith.constant 19 : index
    %145 = vector.load %arg7[%c0_97, %c19_98] : memref<8x324xf32, #tpu.memory_space<vmem>>, vector<8x286xf32>
    tpu.vector_store %arg7[%c0_97, %c19_98], %144 masked %22 {strides = array<i32>} : memref<8x324xf32, #tpu.memory_space<vmem>>, vector<8x286xf32>, vector<8x286xi1>
    %c0_99 = arith.constant 0 : index
    %c0_100 = arith.constant 0 : index
    %146 = vector.load %arg7[%c0_99, %c0_100] : memref<8x324xf32, #tpu.memory_space<vmem>>, vector<8x324xf32>
    %147 = arith.truncf %146 : vector<8x324xf32> to vector<8x324xbf16>
    %148 = vector.extract_strided_slice %147 {offsets = [0, 0], sizes = [8, 286], strides = [1, 1]} : vector<8x324xbf16> to vector<8x286xbf16>
    %149 = vector.extract_strided_slice %147 {offsets = [0, 1], sizes = [8, 286], strides = [1, 1]} : vector<8x324xbf16> to vector<8x286xbf16>
    %150 = vector.extract_strided_slice %147 {offsets = [0, 2], sizes = [8, 286], strides = [1, 1]} : vector<8x324xbf16> to vector<8x286xbf16>
    %151 = vector.extract_strided_slice %147 {offsets = [0, 18], sizes = [8, 286], strides = [1, 1]} : vector<8x324xbf16> to vector<8x286xbf16>
    %152 = vector.extract_strided_slice %147 {offsets = [0, 19], sizes = [8, 286], strides = [1, 1]} : vector<8x324xbf16> to vector<8x286xbf16>
    %153 = vector.extract_strided_slice %147 {offsets = [0, 20], sizes = [8, 286], strides = [1, 1]} : vector<8x324xbf16> to vector<8x286xbf16>
    %154 = vector.extract_strided_slice %147 {offsets = [0, 36], sizes = [8, 286], strides = [1, 1]} : vector<8x324xbf16> to vector<8x286xbf16>
    %155 = vector.extract_strided_slice %147 {offsets = [0, 37], sizes = [8, 286], strides = [1, 1]} : vector<8x324xbf16> to vector<8x286xbf16>
    %156 = vector.extract_strided_slice %147 {offsets = [0, 38], sizes = [8, 286], strides = [1, 1]} : vector<8x324xbf16> to vector<8x286xbf16>
    %157 = tpu.concatenate %148, %149, %150, %151, %152, %153, %154, %155, %156 in 0 : vector<8x286xbf16>, vector<8x286xbf16>, vector<8x286xbf16>, vector<8x286xbf16>, vector<8x286xbf16>, vector<8x286xbf16>, vector<8x286xbf16>, vector<8x286xbf16>, vector<8x286xbf16> -> vector<72x286xbf16>
    %c3 = arith.constant 3 : index
    %c0_101 = arith.constant 0 : index
    %c0_102 = arith.constant 0 : index
    %158 = vector.load %arg2[%c3, %c0_101, %c0_102] : memref<6x8x72xbf16, #tpu.memory_space<vmem>>, vector<1x8x72xbf16>
    %159 = vector.shape_cast %158 : vector<1x8x72xbf16> to vector<8x72xbf16>
    %cst_103 = arith.constant dense<0.000000e+00> : vector<8x286xf32>
    %160 = tpu.matmul %159, %157, %cst_103 {dimension_numbers = #tpu.dot_dimension_numbers<[1], [0], [0], [1], [0, 0, 1, 1], [], []>} : vector<8x72xbf16>, vector<72x286xbf16>, vector<8x286xf32> -> vector<8x286xf32>
    %c3_104 = arith.constant 3 : index
    %c0_105 = arith.constant 0 : index
    %c0_106 = arith.constant 0 : index
    %161 = vector.load %arg3[%c3_104, %c0_105, %c0_106] : memref<6x8x1xf32, #tpu.memory_space<vmem>>, vector<1x8x1xf32>
    %162 = vector.shape_cast %161 : vector<1x8x1xf32> to vector<8x1xf32>
    %163 = vector.broadcast %162 : vector<8x1xf32> to vector<8x286xf32>
    %164 = arith.addf %160, %163 : vector<8x286xf32>
    %cst_107 = arith.constant 0.000000e+00 : f32
    %165 = vector.broadcast %cst_107 : f32 to vector<8x286xf32>
    %166 = arith.maximumf %164, %165 : vector<8x286xf32>
    %c0_108 = arith.constant 0 : index
    %c0_109 = arith.constant 0 : index
    %167 = vector.load %arg8[%c0_108, %c0_109] : memref<8x384xf32, #tpu.memory_space<vmem>>, vector<8x286xf32>
    %168 = arith.addf %166, %167 : vector<8x286xf32>
    %c0_110 = arith.constant 0 : index
    %c0_111 = arith.constant 0 : index
    %169 = vector.load %arg8[%c0_110, %c0_111] : memref<8x384xf32, #tpu.memory_space<vmem>>, vector<8x286xf32>
    tpu.vector_store %arg8[%c0_110, %c0_111], %168 {strides = array<i32>} : memref<8x384xf32, #tpu.memory_space<vmem>>, vector<8x286xf32>,
    %c0_112 = arith.constant 0 : index
    %c19_113 = arith.constant 19 : index
    %170 = vector.load %arg7[%c0_112, %c19_113] : memref<8x324xf32, #tpu.memory_space<vmem>>, vector<8x286xf32>
    tpu.vector_store %arg7[%c0_112, %c19_113], %168 masked %22 {strides = array<i32>} : memref<8x324xf32, #tpu.memory_space<vmem>>, vector<8x286xf32>, vector<8x286xi1>
    %c0_114 = arith.constant 0 : index
    %c0_115 = arith.constant 0 : index
    %171 = vector.load %arg7[%c0_114, %c0_115] : memref<8x324xf32, #tpu.memory_space<vmem>>, vector<8x324xf32>
    %172 = arith.truncf %171 : vector<8x324xf32> to vector<8x324xbf16>
    %173 = vector.extract_strided_slice %172 {offsets = [0, 0], sizes = [8, 286], strides = [1, 1]} : vector<8x324xbf16> to vector<8x286xbf16>
    %174 = vector.extract_strided_slice %172 {offsets = [0, 1], sizes = [8, 286], strides = [1, 1]} : vector<8x324xbf16> to vector<8x286xbf16>
    %175 = vector.extract_strided_slice %172 {offsets = [0, 2], sizes = [8, 286], strides = [1, 1]} : vector<8x324xbf16> to vector<8x286xbf16>
    %176 = vector.extract_strided_slice %172 {offsets = [0, 18], sizes = [8, 286], strides = [1, 1]} : vector<8x324xbf16> to vector<8x286xbf16>
    %177 = vector.extract_strided_slice %172 {offsets = [0, 19], sizes = [8, 286], strides = [1, 1]} : vector<8x324xbf16> to vector<8x286xbf16>
    %178 = vector.extract_strided_slice %172 {offsets = [0, 20], sizes = [8, 286], strides = [1, 1]} : vector<8x324xbf16> to vector<8x286xbf16>
    %179 = vector.extract_strided_slice %172 {offsets = [0, 36], sizes = [8, 286], strides = [1, 1]} : vector<8x324xbf16> to vector<8x286xbf16>
    %180 = vector.extract_strided_slice %172 {offsets = [0, 37], sizes = [8, 286], strides = [1, 1]} : vector<8x324xbf16> to vector<8x286xbf16>
    %181 = vector.extract_strided_slice %172 {offsets = [0, 38], sizes = [8, 286], strides = [1, 1]} : vector<8x324xbf16> to vector<8x286xbf16>
    %182 = tpu.concatenate %173, %174, %175, %176, %177, %178, %179, %180, %181 in 0 : vector<8x286xbf16>, vector<8x286xbf16>, vector<8x286xbf16>, vector<8x286xbf16>, vector<8x286xbf16>, vector<8x286xbf16>, vector<8x286xbf16>, vector<8x286xbf16>, vector<8x286xbf16> -> vector<72x286xbf16>
    %c4 = arith.constant 4 : index
    %c0_116 = arith.constant 0 : index
    %c0_117 = arith.constant 0 : index
    %183 = vector.load %arg2[%c4, %c0_116, %c0_117] : memref<6x8x72xbf16, #tpu.memory_space<vmem>>, vector<1x8x72xbf16>
    %184 = vector.shape_cast %183 : vector<1x8x72xbf16> to vector<8x72xbf16>
    %cst_118 = arith.constant dense<0.000000e+00> : vector<8x286xf32>
    %185 = tpu.matmul %184, %182, %cst_118 {dimension_numbers = #tpu.dot_dimension_numbers<[1], [0], [0], [1], [0, 0, 1, 1], [], []>} : vector<8x72xbf16>, vector<72x286xbf16>, vector<8x286xf32> -> vector<8x286xf32>
    %c4_119 = arith.constant 4 : index
    %c0_120 = arith.constant 0 : index
    %c0_121 = arith.constant 0 : index
    %186 = vector.load %arg3[%c4_119, %c0_120, %c0_121] : memref<6x8x1xf32, #tpu.memory_space<vmem>>, vector<1x8x1xf32>
    %187 = vector.shape_cast %186 : vector<1x8x1xf32> to vector<8x1xf32>
    %188 = vector.broadcast %187 : vector<8x1xf32> to vector<8x286xf32>
    %189 = arith.addf %185, %188 : vector<8x286xf32>
    %cst_122 = arith.constant 0.000000e+00 : f32
    %190 = vector.broadcast %cst_122 : f32 to vector<8x286xf32>
    %191 = arith.maximumf %189, %190 : vector<8x286xf32>
    %c0_123 = arith.constant 0 : index
    %c19_124 = arith.constant 19 : index
    %192 = vector.load %arg7[%c0_123, %c19_124] : memref<8x324xf32, #tpu.memory_space<vmem>>, vector<8x286xf32>
    tpu.vector_store %arg7[%c0_123, %c19_124], %191 masked %22 {strides = array<i32>} : memref<8x324xf32, #tpu.memory_space<vmem>>, vector<8x286xf32>, vector<8x286xi1>
    %c0_125 = arith.constant 0 : index
    %c0_126 = arith.constant 0 : index
    %193 = vector.load %arg7[%c0_125, %c0_126] : memref<8x324xf32, #tpu.memory_space<vmem>>, vector<8x324xf32>
    %194 = arith.truncf %193 : vector<8x324xf32> to vector<8x324xbf16>
    %195 = vector.extract_strided_slice %194 {offsets = [0, 0], sizes = [8, 286], strides = [1, 1]} : vector<8x324xbf16> to vector<8x286xbf16>
    %196 = vector.extract_strided_slice %194 {offsets = [0, 1], sizes = [8, 286], strides = [1, 1]} : vector<8x324xbf16> to vector<8x286xbf16>
    %197 = vector.extract_strided_slice %194 {offsets = [0, 2], sizes = [8, 286], strides = [1, 1]} : vector<8x324xbf16> to vector<8x286xbf16>
    %198 = vector.extract_strided_slice %194 {offsets = [0, 18], sizes = [8, 286], strides = [1, 1]} : vector<8x324xbf16> to vector<8x286xbf16>
    %199 = vector.extract_strided_slice %194 {offsets = [0, 19], sizes = [8, 286], strides = [1, 1]} : vector<8x324xbf16> to vector<8x286xbf16>
    %200 = vector.extract_strided_slice %194 {offsets = [0, 20], sizes = [8, 286], strides = [1, 1]} : vector<8x324xbf16> to vector<8x286xbf16>
    %201 = vector.extract_strided_slice %194 {offsets = [0, 36], sizes = [8, 286], strides = [1, 1]} : vector<8x324xbf16> to vector<8x286xbf16>
    %202 = vector.extract_strided_slice %194 {offsets = [0, 37], sizes = [8, 286], strides = [1, 1]} : vector<8x324xbf16> to vector<8x286xbf16>
    %203 = vector.extract_strided_slice %194 {offsets = [0, 38], sizes = [8, 286], strides = [1, 1]} : vector<8x324xbf16> to vector<8x286xbf16>
    %204 = tpu.concatenate %195, %196, %197, %198, %199, %200, %201, %202, %203 in 0 : vector<8x286xbf16>, vector<8x286xbf16>, vector<8x286xbf16>, vector<8x286xbf16>, vector<8x286xbf16>, vector<8x286xbf16>, vector<8x286xbf16>, vector<8x286xbf16>, vector<8x286xbf16> -> vector<72x286xbf16>
    %c5 = arith.constant 5 : index
    %c0_127 = arith.constant 0 : index
    %c0_128 = arith.constant 0 : index
    %205 = vector.load %arg2[%c5, %c0_127, %c0_128] : memref<6x8x72xbf16, #tpu.memory_space<vmem>>, vector<1x8x72xbf16>
    %206 = vector.shape_cast %205 : vector<1x8x72xbf16> to vector<8x72xbf16>
    %cst_129 = arith.constant dense<0.000000e+00> : vector<8x286xf32>
    %207 = tpu.matmul %206, %204, %cst_129 {dimension_numbers = #tpu.dot_dimension_numbers<[1], [0], [0], [1], [0, 0, 1, 1], [], []>} : vector<8x72xbf16>, vector<72x286xbf16>, vector<8x286xf32> -> vector<8x286xf32>
    %c5_130 = arith.constant 5 : index
    %c0_131 = arith.constant 0 : index
    %c0_132 = arith.constant 0 : index
    %208 = vector.load %arg3[%c5_130, %c0_131, %c0_132] : memref<6x8x1xf32, #tpu.memory_space<vmem>>, vector<1x8x1xf32>
    %209 = vector.shape_cast %208 : vector<1x8x1xf32> to vector<8x1xf32>
    %210 = vector.broadcast %209 : vector<8x1xf32> to vector<8x286xf32>
    %211 = arith.addf %207, %210 : vector<8x286xf32>
    %cst_133 = arith.constant 0.000000e+00 : f32
    %212 = vector.broadcast %cst_133 : f32 to vector<8x286xf32>
    %213 = arith.maximumf %211, %212 : vector<8x286xf32>
    %c0_134 = arith.constant 0 : index
    %c0_135 = arith.constant 0 : index
    %214 = vector.load %arg8[%c0_134, %c0_135] : memref<8x384xf32, #tpu.memory_space<vmem>>, vector<8x286xf32>
    %215 = arith.addf %213, %214 : vector<8x286xf32>
    %c0_136 = arith.constant 0 : index
    %c0_137 = arith.constant 0 : index
    %216 = vector.load %arg8[%c0_136, %c0_137] : memref<8x384xf32, #tpu.memory_space<vmem>>, vector<8x286xf32>
    tpu.vector_store %arg8[%c0_136, %c0_137], %215 {strides = array<i32>} : memref<8x384xf32, #tpu.memory_space<vmem>>, vector<8x286xf32>,
    %c0_138 = arith.constant 0 : index
    %c0_139 = arith.constant 0 : index
    %217 = vector.load %arg8[%c0_138, %c0_139] : memref<8x384xf32, #tpu.memory_space<vmem>>, vector<8x384xf32>
    %218 = arith.truncf %217 : vector<8x384xf32> to vector<8x384xbf16>
    %c0_140 = arith.constant 0 : index
    %c0_141 = arith.constant 0 : index
    %219 = vector.load %arg4[%c0_140, %c0_141] : memref<8x8xbf16, #tpu.memory_space<vmem>>, vector<8x8xbf16>
    %cst_142 = arith.constant dense<0.000000e+00> : vector<8x384xf32>
    %220 = tpu.matmul %219, %218, %cst_142 {dimension_numbers = #tpu.dot_dimension_numbers<[1], [0], [0], [1], [0, 0, 1, 1], [], []>} : vector<8x8xbf16>, vector<8x384xbf16>, vector<8x384xf32> -> vector<8x384xf32>
    %c0_143 = arith.constant 0 : index
    %c0_144 = arith.constant 0 : index
    %221 = vector.load %arg5[%c0_143, %c0_144] : memref<8x1xf32, #tpu.memory_space<vmem>>, vector<8x1xf32>
    %222 = vector.broadcast %221 : vector<8x1xf32> to vector<8x384xf32>
    %223 = arith.addf %220, %222 : vector<8x384xf32>
    %224 = vector.shape_cast %223 : vector<8x384xf32> to vector<1x8x384xf32>
    %c0_145 = arith.constant 0 : index
    %c0_146 = arith.constant 0 : index
    %c0_147 = arith.constant 0 : index
    %225 = vector.load %arg6[%c0_145, %c0_146, %c0_147] : memref<1x8x384xf32, #tpu.memory_space<vmem>>, vector<1x8x384xf32>
    tpu.vector_store %arg6[%c0_145, %c0_146, %c0_147], %224 {strides = array<i32>} : memref<1x8x384xf32, #tpu.memory_space<vmem>>, vector<1x8x384xf32>,
    return
  }
  func.func @transform_0(%arg0: i32) -> (i32, i32, i32) {
    %c0_i32 = arith.constant 0 : i32
    %c0_i32_0 = arith.constant 0 : i32
    %c0_i32_1 = arith.constant 0 : i32
    return %arg0, %c0_i32, %c0_i32_0 : i32, i32, i32
  }
  func.func @transform_1(%arg0: i32) -> (i32, i32, i32) {
    %c0_i32 = arith.constant 0 : i32
    %c0_i32_0 = arith.constant 0 : i32
    %c0_i32_1 = arith.constant 0 : i32
    %c0_i32_2 = arith.constant 0 : i32
    return %c0_i32, %c0_i32_0, %c0_i32_1 : i32, i32, i32
  }
  func.func @transform_2(%arg0: i32) -> (i32, i32, i32) {
    %c0_i32 = arith.constant 0 : i32
    %c0_i32_0 = arith.constant 0 : i32
    %c0_i32_1 = arith.constant 0 : i32
    %c0_i32_2 = arith.constant 0 : i32
    return %c0_i32, %c0_i32_0, %c0_i32_1 : i32, i32, i32
  }
  func.func @transform_3(%arg0: i32) -> (i32, i32) {
    %c0_i32 = arith.constant 0 : i32
    %c0_i32_0 = arith.constant 0 : i32
    %c0_i32_1 = arith.constant 0 : i32
    return %c0_i32, %c0_i32_0 : i32, i32
  }
  func.func @transform_4(%arg0: i32) -> (i32, i32) {
    %c0_i32 = arith.constant 0 : i32
    %c0_i32_0 = arith.constant 0 : i32
    %c0_i32_1 = arith.constant 0 : i32
    return %c0_i32, %c0_i32_0 : i32, i32
  }
  func.func @transform_5(%arg0: i32) -> (i32, i32, i32) {
    %c0_i32 = arith.constant 0 : i32
    %c0_i32_0 = arith.constant 0 : i32
    %c0_i32_1 = arith.constant 0 : i32
    return %arg0, %c0_i32, %c0_i32_0 : i32, i32, i32
  }
}

</mosaic_0001>

<bundles_post_ra>
// kernel: filter_forward.1
= control target key start
LH: loop header
LB: loop body
LE: loop exit
PB: predicated region body
PF: predicated region fallthrough
CT: control target
= control target key end

     0   :  { %s2377_s18 = smov 0   ;;  %s2982_s0 = inlined_call_operand.vmem [shape: f32[2,8,256], index: 0, kind: input, shape index: {}]   ;;  %s2983_s1 = inlined_call_operand.vmem [shape: bf16[6,8,72], index: 1, kind: input, shape index: {}]   ;;  %s2984_s2 = inlined_call_operand.vmem [shape: f32[6,8,1], index: 2, kind: input, shape index: {}]   ;;  %s2985_s3 = inlined_call_operand.vmem [shape: bf16[8,8], index: 3, kind: input, shape index: {}]   ;;  %s2986_s4 = inlined_call_operand.vmem [shape: f32[8,1], index: 4, kind: input, shape index: {}]   ;;  %s2987_s5 = inlined_call_operand.vmem [shape: f32[2,8,384], index: 5, kind: output, shape index: {}]  }
   0x1 LB: > { %s2092_s19 = sadd.s32 4294967295, %s2318_s18   ;;  %p2096_p0 = scmp.ge.s32.totalorder %s2318_s18, 1  ;;  %s2318_s18 = sphi %s2377_s18, %s15_s18  }
   0x2   : > { %p187_p1 = scmp.lt.s32.totalorder %s2318_s18, 3 }
   0x4   : > { %p188_p2 = pnand %p2096_p0, %p187_p1 }
   0x5   : > { %p215_p3 = scmp.lt.s32.totalorder (!%p188_p2), %s2092_s19, 1  ;;  %v2320_v0 = vmov (!%p188_p2), 0.0   ;;  %s2321_s24 = smov (!%p188_p2), 31   ;;  %vm271_vm0 = vcmask (!%p188_p2), 556032   ;;  %vm322_vm1 = vcmask (!%p188_p2), 121856   ;;  %vm278_vm2 = vcmask (!%p188_p2), 285848  }
   0x6   : > { %191 = sbr.rel (%p188_p2) target bundleno = 3320 (0xcf8), region = 40  ;;  %270 = vst [vmem:[#allocation2 + $0x8] sm:$0xff] (!%p188_p2), %v2320_v0  ;;  %269 = vst [vmem:[#allocation2] sm:$0xff] (!%p188_p2), %v2320_v0  ;;  %2184 = vmatprep.subr.bf16.mxu1 (!%p188_p2), %v2320_v0  ;;  %s2322_s25 = smov (!%p188_p2), 19   ;;  %vm329_vm3 = vcmask (!%p188_p2), 269448   ;;  %vm336_vm4 = vcmask (!%p188_p2), 417048   ;;  %v226_v29 = vlaneseq (!%p188_p2) }
   0x7   : > { %391 = vst [vmem:[#allocation3 + $0x10] sm:$0xff] (!%p188_p2), %v2320_v0  ;;  %s2323_s26 = smov (!%p188_p2), 33   ;;  %s2324_s27 = smov (!%p188_p2), 35   ;;  %272 = vst.msk [vmem:[#allocation2 + $0x10] sm:$0xff] (!%p188_p2), %vm271_vm0, %v2320_v0  ;;  %vm285_vm5 = vcmask (!%p188_p2), 433448   ;;  %vm343_vm6 = vcmask (!%p188_p2), 564648  }
   0x8   : > { %s2325_s28 = smov (!%p188_p2), 21   ;;  %s2326_s29 = smov (!%p188_p2), 37   ;;  %vm292_vm7 = vcmask (!%p188_p2), 581048   ;;  %vm350_vm8 = vcmask (!%p188_p2), 712248   ;;  %vm299_vm9 = vcmask (!%p188_p2), 728648   ;;  %vm357_vm10 = vcmask (!%p188_p2), 859848  }
   0x9   : > { %s2327_s30 = smov (!%p188_p2), 23   ;;  %s2328_s6 = smov (!%p188_p2), 39   ;;  %vm373_vm11 = vcmask (!%p188_p2), 105472   ;;  %vm306_vm12 = vcmask (!%p188_p2), 876248   ;;  %vm364_vm13 = vcmask (!%p188_p2), 1007448   ;;  %vm380_vm14 = vcmask (!%p188_p2), 253048  }
   0xa   : > { %s2329_s7 = smov (!%p188_p2), 25   ;;  %s2330_s8 = smov (!%p188_p2), 41   ;;  %vm371_vm15 = vcmask (!%p188_p2), 1048552   ;;  %vm313_vm0 = vcmask (!%p188_p2), 1023848   ;;  %v2344_v28 = vmov (!%p188_p2), 0   ;;  %v227_v30 = vand.u32 (!%p188_p2), 127, %v226_v29 }
   0xb   : > { %s2331_s9 = smov (!%p188_p2), 45   ;;  %s2332_s10 = smov (!%p188_p2), 27   ;;  %599 = vmatprep.mubr.bf16.mxu0 (!%p188_p2), %v2344_v28  ;;  %2310 = vset.pattern.permute.xlu0 (!%p188_p2), %v2344_v28  ;;  %v548_v37 = vld [vmem:[%s2984_s2] sm:$0xff] (!%p188_p2) }
   0xc   : > { %s2333_s11 = smov (!%p188_p2), 43   ;;  %s2334_s12 = smov (!%p188_p2), 47   ;;  %2311 = vset.pattern.permute.xlu1 (!%p188_p2), %v2344_v28  ;;  %v228_v31 = vadd.s32 (!%p188_p2), 128, %v227_v30  ;;  %v2103_v32 = vadd.s32 (!%p188_p2), 4294967224, %v227_v30  ;;  %v229_v33 = vadd.s32 (!%p188_p2), 256, %v227_v30 }
   0xd   : > { %s3016_s19 = smov (!%p215_p3, %s2092_s19), 1  ;;  %s2335_s13 = smov 29  }
   0xe   : > { %s2145_s20 = sshll.u32 %s3016_s19, 4  ;;  %s2336_s14 = smov 49   ;;  %v2101_v34 = vadd.s32 4294967152, %v228_v31  ;;  %v2102_v36 = vadd.s32 4294967152, %v229_v33 }
   0xf   : > { %s219_s23 = scalar_lea.vmem %s2982_s0, %s2145_s20  ;;  %s2337_s15 = smov 126  }
  0x10   : > { %v315_v1 = vld [vmem:[%s219_s23] sm:$0xff]  ;;  %v331_v2 = vld [vmem:[%s219_s23 + $0x8] sm:$0xff]  ;;  %s2338_s16 = smov 127   ;;  %s2339_s17 = smov 109   ;;  %v2105_v40 = vadd.s32 4294967224, %v2102_v36 }
  0x11   : > { %317 = vrot.lane.b32.xlu0 %v315_v1, %s2321_s24  ;;  %275 = vrot.lane.b32.xlu1 %v315_v1, %s2322_s25  ;;  %s2340_s20 = smov 110   ;;  %s2341_s21 = smov 108  }
  0x12   : > { %s2342_s22 = smov 92   ;;  %s2343_s23 = smov 91   ;;  %v2108_v44 = vadd.s32 4294967260, %v2105_v40 }
  0x13   : > { %s2346_s24 = smov 90  }
  0x14   : > { %v2111_v48 = vadd.s32 4294967278, %v2108_v44 }
  0x15   : > { %326 = vrot.lane.b32.xlu0 %v315_v1, %s2323_s26  ;;  %333 = vrot.lane.b32.xlu1 %v331_v2, %s2324_s27 }
  0x19   : > { %282 = vrot.lane.b32.xlu0 %v315_v1, %s2325_s28  ;;  %340 = vrot.lane.b32.xlu1 %v331_v2, %s2326_s29 }
  0x1d   : > { %289 = vrot.lane.b32.xlu0 %v315_v1, %s2327_s30  ;;  %347 = vrot.lane.b32.xlu1 %v331_v2, %s2328_s6 }
  0x21   : > { %296 = vrot.lane.b32.xlu0 %v315_v1, %s2329_s7  ;;  %354 = vrot.lane.b32.xlu1 %v331_v2, %s2330_s8 }
  0x25   : > { %368 = vrot.lane.b32.xlu0 %v331_v2, %s2331_s9  ;;  %303 = vrot.lane.b32.xlu1 %v315_v1, %s2332_s10 }
  0x29   : > { %361 = vrot.lane.b32.xlu0 %v331_v2, %s2333_s11  ;;  %377 = vrot.lane.b32.xlu1 %v331_v2, %s2334_s12 }
  0x2d   : > { %310 = vrot.lane.b32.xlu0 %v315_v1, %s2335_s13  ;;  %384 = vrot.lane.b32.xlu1 %v331_v2, %s2336_s14 }
  0x83   : > { %v318_v3 = vpop.permute.xlu0 %317  ;;  %v276_v4 = vpop.permute.xlu1 %275 }
  0x84   : > { %323 = vst.msk [vmem:[#allocation2 + $0x8] sm:$0xff] %vm322_vm1, %v318_v3  ;;  %vm387_vm1 = vcmask 400648  }
  0x85   : > { %279 = vst.msk [vmem:[#allocation2] sm:$0xff] %vm278_vm2, %v276_v4  ;;  %vm320_vm2 = vcmask 1048568  }
  0x87   : > { %v327_v5 = vpop.permute.xlu0 %326  ;;  %v334_v6 = vpop.permute.xlu1 %333 }
  0x88   : > { %330 = vst.msk [vmem:[#allocation2 + $0x8] sm:$0xff] %vm329_vm3, %v327_v5  ;;  %vm2988_vm3 = vmmov 0  }
  0x89   : > { %337 = vst.msk [vmem:[#allocation2 + $0x8] sm:$0xff] %vm336_vm4, %v334_v6  ;;  %2194 = vmatprep.mubr.msk.bf16.mxu1 %vm2988_vm3, %v2320_v0  ;;  %vm239_vm4 = vcmp.ge.s32.totalorder %v227_v30, 72 }
  0x8a   : > { %v245_v35 = vsel %vm239_vm4, %v2103_v32, %v227_v30  ;;  %vm404_vm4 = vcmask 891904  }
  0x8b   : > { %v283_v7 = vpop.permute.xlu0 %282  ;;  %v341_v8 = vpop.permute.xlu1 %340  ;;  %v2106_v38 = vadd.s32 4294967260, %v245_v35 }
  0x8c   : > { %286 = vst.msk [vmem:[#allocation2] sm:$0xff] %vm285_vm5, %v283_v7  ;;  %vm231_vm5 = vcmp.ge.s32.totalorder %v228_v31, 144 }
  0x8d   : > { %344 = vst.msk [vmem:[#allocation2 + $0x8] sm:$0xff] %vm343_vm6, %v341_v8  ;;  %vm248_vm6 = vcmp.ge.s32.totalorder %v245_v35, 36  ;;  %v237_v39 = vsel %vm231_vm5, %v2101_v34, %v228_v31  ;;  %vm468_vm5 = vcmask 883712  }
  0x8e   : > { %v2104_v41 = vadd.s32 4294967224, %v237_v39  ;;  %v254_v42 = vsel %vm248_vm6, %v2106_v38, %v245_v35  ;;  %vm2991_vm6 = vcmask 744448  }
  0x8f   : > { %v290_v9 = vpop.permute.xlu0 %289  ;;  %v348_v10 = vpop.permute.xlu1 %347  ;;  %v2109_v43 = vadd.s32 4294967278, %v254_v42 }
  0x90   : > { %293 = vst.msk [vmem:[#allocation2] sm:$0xff] %vm292_vm7, %v290_v9  ;;  %vm240_vm7 = vcmp.ge.s32.totalorder %v237_v39, 72 }
  0x91   : > { %351 = vst.msk [vmem:[#allocation2 + $0x8] sm:$0xff] %vm350_vm8, %v348_v10  ;;  %vm257_vm8 = vcmp.ge.s32.totalorder %v254_v42, 18  ;;  %v246_v45 = vsel %vm240_vm7, %v2104_v41, %v237_v39  ;;  %vm477_vm7 = vcmask 752640  }
  0x92   : > { %v2107_v46 = vadd.s32 4294967260, %v246_v45  ;;  %v263_v47 = vsel %vm257_vm8, %v2109_v43, %v254_v42  ;;  %vm495_vm8 = vcmask 736256  }
  0x93   : > { %v297_v11 = vpop.permute.xlu0 %296  ;;  %v355_v12 = vpop.permute.xlu1 %354 }
  0x94   : > { %300 = vst.msk [vmem:[#allocation2] sm:$0xff] %vm299_vm9, %v297_v11  ;;  %vm249_vm9 = vcmp.ge.s32.totalorder %v246_v45, 36 }
  0x95   : > { %358 = vst.msk [vmem:[#allocation2 + $0x8] sm:$0xff] %vm357_vm10, %v355_v12  ;;  %vm259_vm10 = vcmp.ge.s32.totalorder %v2108_v44, 18  ;;  %v255_v49 = vsel %vm249_vm9, %v2107_v46, %v246_v45  ;;  %vm2990_vm9 = vcmask 588800  }
  0x96   : > { %v2110_v51 = vadd.s32 4294967278, %v255_v49  ;;  %v265_v52 = vsel %vm259_vm10, %v2111_v48, %v2108_v44  ;;  %vm680_vm10 = vcmask 1047704  }
  0x97   : > { %v369_v13 = vpop.permute.xlu0 %368  ;;  %v304_v14 = vpop.permute.xlu1 %303 }
  0x98   : > { %374 = vst.msk [vmem:[#allocation2 + $0x10] sm:$0xff] %vm373_vm11, %v369_v13  ;;  %vm266_vm11 = vcmp.lt.s32.totalorder %v263_v47, 16 }
  0x99   : > { %307 = vst.msk [vmem:[#allocation2] sm:$0xff] %vm306_vm12, %v304_v14  ;;  %v666_v50 = vsel %vm266_vm11, 1, %v2344_v28  ;;  %vm258_vm12 = vcmp.ge.s32.totalorder %v255_v49, 18 }
  0x9a   : > { %v264_v53 = vsel %vm258_vm12, %v2110_v51, %v255_v49  ;;  %v547_v51 = vld [vmem:[%s2983_s1] sm:$0xf]  ;;  %vm660_vm12 = vcmask 154624  }
  0x9b   : > { %v362_v15 = vpop.permute.xlu0 %361  ;;  %v378_v16 = vpop.permute.xlu1 %377 }
  0x9c   : > { %365 = vst.msk [vmem:[#allocation2 + $0x8] sm:$0xff] %vm364_vm13, %v362_v15  ;;  %vm267_vm13 = vcmp.lt.s32.totalorder %v264_v53, 16 }
  0x9d   : > { %381 = vst.msk [vmem:[#allocation2 + $0x10] sm:$0xff] %vm380_vm14, %v378_v16  ;;  %vm268_vm14 = vcmp.lt.s32.totalorder %v265_v52, 16  ;;  %v667_v54 = vsel %vm267_vm13, 1, %v2344_v28 }
  0x9e   : > { %372 = vst.msk [vmem:[#allocation2 + $0x8] sm:$0xff] %vm371_vm15, %v369_v13  ;;  %v668_v55 = vsel %vm268_vm14, 1, %v2344_v28  ;;  %vm498_vm15 = vcmask 1043456  }
  0x9f   : > { %v311_v17 = vpop.permute.xlu0 %310  ;;  %v385_v18 = vpop.permute.xlu1 %384 }
  0xa0   : > { %314 = vst.msk [vmem:[#allocation2] sm:$0xff] %vm313_vm0, %v311_v17  ;;  %vm432_vm0 = vcmask 1039360  }
  0xa1   : > { %388 = vst.msk [vmem:[#allocation2 + $0x10] sm:$0xff] %vm387_vm1, %v385_v18  ;;  %vm441_vm1 = vcmask 1031168  }
  0xa2   : > { %321 = vst.msk [vmem:[#allocation2] sm:$0xff] %vm320_vm2, %v318_v3  ;;  %vm450_vm2 = vcmask 900096  }
  0xa5   : > { %v2418_v24 = vld [vmem:[#allocation2 + $0x8] sm:$0xff] }
  0xa6   : > { %v2425_v25 = vpack.c.bf16 %v2418_v24, %v2418_v24 }
  0xa8   : > { %v2397_v19 = vld [vmem:[#allocation2 + $0x10] sm:$0xff]  ;;  %v424_v27 = vrot.slane %v2425_v25, 4 }
  0xa9   : > { %v2401_v20 = vpack.c.bf16 %v2397_v19, %v2397_v19  ;;  %v2406_v22 = vld [vmem:[#allocation2] sm:$0xff] }
  0xaa   : > { %v2413_v23 = vpack.c.bf16 %v2406_v22, %v2406_v22 }
  0xab   : > { %439 = vrot.lane.b32.xlu0 %v2401_v20, %s2337_s15  ;;  %v425_v21 = vrot.slane %v2401_v20, 4 }
  0xac   : > { %v423_v26 = vrot.slane %v2413_v23, 4 }
  0xad   : > { %430 = vrot.lane.b32.xlu1 %v425_v21, %s2338_s16 }
  0xaf   : > { %457 = vrot.lane.b32.xlu0 %v2401_v20, %s2339_s17 }
  0xb1   : > { %435 = vrot.lane.b32.xlu1 %v2413_v23, %s2337_s15 }
  0xb3   : > { %448 = vrot.lane.b32.xlu0 %v425_v21, %s2340_s20 }
  0xb5   : > { %453 = vrot.lane.b32.xlu1 %v2413_v23, %s2339_s17 }
  0xb7   : > { %466 = vrot.lane.b32.xlu0 %v425_v21, %s2341_s21 }
  0xb9   : > { %437 = vrot.lane.b32.xlu1 %v2425_v25, %s2337_s15 }
  0xbb   : > { %426 = vrot.lane.b32.xlu0 %v423_v26, %s2338_s16 }
  0xbd   : > { %455 = vrot.lane.b32.xlu1 %v2425_v25, %s2339_s17 }
  0xbf   : > { %444 = vrot.lane.b32.xlu0 %v423_v26, %s2340_s20 }
  0xc1   : > { %473 = vrot.lane.b32.xlu1 %v2425_v25, %s2342_s22 }
  0xc3   : > { %428 = vrot.lane.b32.xlu0 %v424_v27, %s2338_s16 }
  0xc5   : > { %471 = vrot.lane.b32.xlu1 %v2413_v23, %s2342_s22 }
  0xc7   : > { %462 = vrot.lane.b32.xlu0 %v423_v26, %s2341_s21 }
  0xc9   : > { %446 = vrot.lane.b32.xlu1 %v424_v27, %s2340_s20 }
  0xcb   : > { %475 = vrot.lane.b32.xlu0 %v2401_v20, %s2342_s22 }
  0xcd   : > { %464 = vrot.lane.b32.xlu1 %v424_v27, %s2341_s21 }
  0xcf   : > { %484 = vrot.lane.b32.xlu0 %v425_v21, %s2343_s23 }
  0xd1   : > { %482 = vrot.lane.b32.xlu1 %v424_v27, %s2343_s23 }
  0xd3   : > { %480 = vrot.lane.b32.xlu0 %v423_v26, %s2343_s23 }
  0xd5   : > { %489 = vrot.lane.b32.xlu1 %v2413_v23, %s2346_s24 }
  0xd7   : > { %491 = vrot.lane.b32.xlu0 %v2425_v25, %s2346_s24 }
  0xd9   : > { %493 = vrot.lane.b32.xlu1 %v2401_v20, %s2346_s24 }
  0xdb   : > { %551 = vperm.xlu0 %2310, %v548_v37  }
  0xdd   : > { %671 = vrot.lane.b32.xlu1 %v667_v54, %s2322_s25 }
  0xdf   : > { %669 = vrot.lane.b32.xlu0 %v666_v50, %s2322_s25 }
  0xe1   : > { %673 = vrot.lane.b32.xlu1 %v668_v55, %s2322_s25 }
 0x11d   : > { %v440_v56 = vpop.permute.xlu0 %439 }
 0x11f   : > { %v431_v57 = vpop.permute.xlu1 %430 }
 0x120   : > { %v509_v58 = vsel %vm498_vm15, %v2401_v20, %v431_v57 }
 0x121   : > { %v458_v59 = vpop.permute.xlu0 %457  ;;  %2185 = vmatpush3.bf16.msra.mxu1 %v509_v58 }
 0x122   : > { %2186 = vmatprep.subr.bf16.mxu1 %v2320_v0 }
 0x123   : > { %v436_v60 = vpop.permute.xlu1 %435 }
 0x125   : > { %v449_v61 = vpop.permute.xlu0 %448 }
 0x126   : > { %v521_v62 = vsel %vm498_vm15, %v440_v56, %v449_v61 }
 0x127   : > { %2187 = vmatpush3.bf16.msra.mxu1 %v521_v62  ;;  %v454_v63 = vpop.permute.xlu1 %453 }
 0x128   : > { %2188 = vmatprep.subr.bf16.mxu1 %v2320_v0 }
 0x129   : > { %v467_v1 = vpop.permute.xlu0 %466 }
 0x12a   : > { %v533_v2 = vsel %vm498_vm15, %v458_v59, %v467_v1 }
 0x12b   : > { %2189 = vmatpush3.bf16.msra.mxu1 %v533_v2  ;;  %v438_v3 = vpop.permute.xlu1 %437 }
 0x12c   : > { %2190 = vmatprep.subr.bf16.mxu1 %v2320_v0  ;;  %v442_v16 = vsel %vm441_vm1, %v436_v60, %v438_v3  ;;  %v443_v17 = vsel %vm441_vm1, %v438_v3, %v440_v56 }
 0x12d   : > { %v427_v4 = vpop.permute.xlu0 %426 }
 0x12f   : > { %v456_v5 = vpop.permute.xlu1 %455 }
 0x130   : > { %v460_v27 = vsel %vm404_vm4, %v454_v63, %v456_v5  ;;  %v461_v29 = vsel %vm404_vm4, %v456_v5, %v458_v59 }
 0x131   : > { %v445_v6 = vpop.permute.xlu0 %444 }
 0x133   : > { %v474_v7 = vpop.permute.xlu1 %473 }
 0x135   : > { %v429_v8 = vpop.permute.xlu0 %428 }
 0x136   : > { %v434_v9 = vsel %vm432_vm0, %v429_v8, %v431_v57  ;;  %v433_v10 = vsel %vm432_vm0, %v427_v4, %v429_v8 }
 0x137   : > { %v472_v11 = vpop.permute.xlu1 %471  ;;  %v505_v12 = vsel %vm498_vm15, %v2425_v25, %v434_v9  ;;  %v501_v13 = vsel %vm498_vm15, %v2413_v23, %v433_v10 }
 0x138   : > { %567 = vmatprep.subr.bf16.mxu0 %v505_v12  ;;  %v478_v41 = vsel %vm477_vm7, %v472_v11, %v474_v7 }
 0x139   : > { %v463_v14 = vpop.permute.xlu0 %462  ;;  %568 = vmatpush1.bf16.msra.mxu0 %v501_v13 }
 0x13b   : > { %v447_v15 = vpop.permute.xlu1 %446 }
 0x13c   : > { %v451_v18 = vsel %vm450_vm2, %v445_v6, %v447_v15  ;;  %v452_v20 = vsel %vm450_vm2, %v447_v15, %v449_v61 }
 0x13d   : > { %v476_v21 = vpop.permute.xlu0 %475  ;;  %v517_v25 = vsel %vm498_vm15, %v443_v17, %v452_v20  ;;  %v513_v23 = vsel %vm498_vm15, %v442_v16, %v451_v18 }
 0x13e   : > { %569 = vmatprep.subr.bf16.mxu0 %v517_v25  ;;  %v479_v37 = vsel %vm477_vm7, %v474_v7, %v476_v21 }
 0x13f   : > { %570 = vmatpush1.bf16.msra.mxu0 %v513_v23  ;;  %v465_v26 = vpop.permute.xlu1 %464 }
 0x140   : > { %v469_v30 = vsel %vm468_vm5, %v463_v14, %v465_v26  ;;  %v470_v31 = vsel %vm468_vm5, %v465_v26, %v467_v1 }
 0x141   : > { %v485_v32 = vpop.permute.xlu0 %484  ;;  %v529_v33 = vsel %vm498_vm15, %v461_v29, %v470_v31  ;;  %v525_v34 = vsel %vm498_vm15, %v460_v27, %v469_v30  ;;  %v2116_v29 = vld [vmem:[%s2984_s2 + $0x8] sm:$0xff] }
 0x142   : > { %571 = vmatprep.subr.bf16.mxu0 %v529_v33  ;;  %v545_v35 = vsel %vm498_vm15, %v476_v21, %v485_v32 }
 0x143   : > { %572 = vmatpush1.bf16.msra.mxu0 %v525_v34  ;;  %2191 = vmatpush3.bf16.msra.mxu1 %v545_v35  ;;  %v483_v36 = vpop.permute.xlu1 %482 }
 0x144   : > { %v488_v38 = vsel %vm2991_vm6, %v483_v36, %v485_v32  ;;  %2192 = vmatprep.subr.bf16.mxu1 %v2320_v0 }
 0x145   : > { %v481_v39 = vpop.permute.xlu0 %480  ;;  %v541_v40 = vsel %vm498_vm15, %v479_v37, %v488_v38 }
 0x146   : > { %v487_v42 = vsel %vm2991_vm6, %v481_v39, %v483_v36  ;;  %573 = vmatprep.subr.bf16.mxu0 %v541_v40 }
 0x147   : > { %v490_v43 = vpop.permute.xlu1 %489  ;;  %v537_v44 = vsel %vm498_vm15, %v478_v41, %v487_v42 }
 0x148   : > { %574 = vmatpush1.bf16.msra.mxu0 %v537_v44 }
 0x149   : > { %v492_v45 = vpop.permute.xlu0 %491 }
 0x14a   : > { %v496_v46 = vsel %vm495_vm8, %v490_v43, %v492_v45 }
 0x14b   : > { %v494_v47 = vpop.permute.xlu1 %493  ;;  %v559_v50 = vsel %vm498_vm15, %v496_v46, 0 }
 0x14c   : > { %v497_v48 = vsel %vm495_vm8, %v492_v45, %v494_v47  ;;  %v565_v49 = vsel %vm498_vm15, %v494_v47, 0 }
 0x14d   : > { %2112 = vmatprep.subr.msk.bf16.mxu0 %vm498_vm15, %v497_v48  ;;  %2193 = vmatpush3.bf16.msra.mxu1 %v565_v49 }
 0x14e   : > { %576 = vmatpush1.bf16.msra.mxu0 %v559_v50  ;;  %2198 = vmatprep.subr.bf16.mxu1 %v2320_v0 }
 0x14f   : > { %v672_v4 = vpop.permute.xlu1 %671 }
 0x150   : > { %2195 = vmatmul.mubr.msk.bf16.vlgmr.msra.gmra.mrb[0].mxu1 %vm2990_vm9, %v547_v51 }
 0x151   : > { %2113 = vmatmul.mubr.msk.bf16.vlgmr.msra.gmra.mrb[0].mxu0 %vm2990_vm9, %v547_v51  ;;  %2208 = vmatprep.mubr.msk.bf16.mxu1 %vm2988_vm3, %v2320_v0  ;;  %vm684_vm3 = vcmask 400384  }
 0x152   : > { %864 = vmatprep.mubr.bf16.mxu0 %v2344_v28 }
 0x153   : > { %v674_v6 = vpop.permute.xlu1 %673 }
 0x154   : > { %v676_v9 = vsel %vm660_vm12, %v672_v4, %v674_v6 }
 0x155   : > { %vm679_vm9 = vcmp.ne.s32.totalorder %v676_v9, 0 }
 0x15a   : > { %v552_v52 = vpop.permute.xlu0 %551 }
 0x15e   : > { %v670_v5 = vpop.permute.xlu0 %669 }
 0x15f   : > { %vm677_vm11 = vcmp.ne.s32.totalorder %v670_v5, 0  ;;  %v2523_v8 = vsel %vm660_vm12, %v670_v5, %v672_v4 }
 0x160   : > { %vm2518_vm13 = vmand %vm680_vm10, %vm677_vm11  ;;  %vm678_vm14 = vcmp.ne.s32.totalorder %v2523_v8, 0  ;;  %vm2997_vm11 = vmmov 0  }
 0x161   : > { %vm2532_vm10 = vmand %vm684_vm3, %vm679_vm9  ;;  %vm2996_vm3 = vcmask 588800   ;;  %vm412_vm9 = vcmask 244736  }
 0x223   : > { %v642_v53 = vpop.f32.mrb[0].mxu1 }
 0x224   : > { %v601_v54 = vpop.f32.mrb[0].mxu0  ;;  %v2196_v55 = vpop.f32.mrb[1].mxu1  ;;  %v643_v63 = vadd.f32 %v642_v53, %v552_v52 }
 0x225   : > { %v602_v56 = vadd.f32 %v601_v54, %v552_v52  ;;  %v603_v57 = vpop.f32.mrb[1].mxu0  ;;  %v645_v58 = vpop.f32.mrb[2].mxu1 }
 0x226   : > { %v604_v59 = vadd.f32 %v603_v57, %v552_v52  ;;  %v605_v60 = vpop.f32.mrb[2].mxu0  ;;  %v2197_v61 = vpop.f32.mrb[3].mxu1  ;;  %v650_v3 = vmax.f32 %v643_v63, 0.0 }
 0x227   : > { %v648_v62 = vmax.f32 %v602_v56, 0.0  ;;  %v606_v1 = vpop.f32.mrb[3].mxu0 }
 0x228   : > { %v649_v2 = vmax.f32 %v604_v59, 0.0 }
 0x229   : > { %654 = vrot.lane.b32.xlu1 %v648_v62, %s2322_s25 }
 0x22a   : > { %656 = vrot.lane.b32.xlu0 %v649_v2, %s2322_s25 }
 0x22d   : > { %658 = vrot.lane.b32.xlu1 %v650_v3, %s2322_s25 }
 0x29b   : > { %v655_v10 = vpop.permute.xlu1 %654 }
 0x29c   : > { %682 = vst.msk [vmem:[#allocation2] sm:$0xff] %vm2518_vm13, %v655_v10  ;;  %v657_v11 = vpop.permute.xlu0 %656 }
 0x29d   : > { %v661_v12 = vsel %vm660_vm12, %v655_v10, %v657_v11 }
 0x29e   : > { %683 = vst.msk [vmem:[#allocation2 + $0x8] sm:$0xff] %vm678_vm14, %v661_v12 }
 0x29f   : > { %v659_v13 = vpop.permute.xlu1 %658 }
 0x2a0   : > { %v662_v15 = vsel %vm660_vm12, %v657_v11, %v659_v13 }
 0x2a1   : > { %686 = vst.msk [vmem:[#allocation2 + $0x10] sm:$0xff] %vm2532_vm10, %v662_v15 }
 0x2a3   : > { %v687_v16 = vld [vmem:[#allocation2] sm:$0xff] }
 0x2a4   : > { %v690_v17 = vpack.c.bf16 %v687_v16, %v687_v16 }
 0x2a5   : > { %v688_v25 = vld [vmem:[#allocation2 + $0x8] sm:$0xff] }
 0x2a6   : > { %707 = vrot.lane.b32.xlu1 %v690_v17, %s2337_s15  ;;  %v696_v18 = vrot.slane %v690_v17, 4  ;;  %v691_v23 = vpack.c.bf16 %v688_v25, %v688_v25 }
 0x2a8   : > { %699 = vrot.lane.b32.xlu0 %v696_v18, %s2338_s16  ;;  %v689_v20 = vld [vmem:[#allocation2 + $0x10] sm:$0xff]  ;;  %v697_v27 = vrot.slane %v691_v23, 4 }
 0x2a9   : > { %v692_v21 = vpack.c.bf16 %v689_v20, %v689_v20 }
 0x2aa   : > { %723 = vrot.lane.b32.xlu1 %v690_v17, %s2339_s17 }
 0x2ab   : > { %v698_v26 = vrot.slane %v692_v21, 4 }
 0x2ac   : > { %711 = vrot.lane.b32.xlu0 %v692_v21, %s2337_s15 }
 0x2ae   : > { %739 = vrot.lane.b32.xlu1 %v690_v17, %s2342_s22 }
 0x2b0   : > { %715 = vrot.lane.b32.xlu0 %v696_v18, %s2340_s20 }
 0x2b2   : > { %709 = vrot.lane.b32.xlu1 %v691_v23, %s2337_s15 }
 0x2b4   : > { %727 = vrot.lane.b32.xlu0 %v692_v21, %s2339_s17 }
 0x2b6   : > { %725 = vrot.lane.b32.xlu1 %v691_v23, %s2339_s17 }
 0x2b8   : > { %731 = vrot.lane.b32.xlu0 %v696_v18, %s2341_s21 }
 0x2ba   : > { %741 = vrot.lane.b32.xlu1 %v691_v23, %s2342_s22 }
 0x2bc   : > { %743 = vrot.lane.b32.xlu0 %v692_v21, %s2342_s22 }
 0x2be   : > { %703 = vrot.lane.b32.xlu1 %v698_v26, %s2338_s16 }
 0x2c0   : > { %701 = vrot.lane.b32.xlu0 %v697_v27, %s2338_s16 }
 0x2c2   : > { %717 = vrot.lane.b32.xlu1 %v697_v27, %s2340_s20 }
 0x2c4   : > { %719 = vrot.lane.b32.xlu0 %v698_v26, %s2340_s20 }
 0x2c6   : > { %733 = vrot.lane.b32.xlu1 %v697_v27, %s2341_s21 }
 0x2c8   : > { %735 = vrot.lane.b32.xlu0 %v698_v26, %s2341_s21 }
 0x2ca   : > { %749 = vrot.lane.b32.xlu1 %v697_v27, %s2343_s23 }
 0x2cc   : > { %751 = vrot.lane.b32.xlu0 %v698_v26, %s2343_s23 }
 0x2ce   : > { %755 = vrot.lane.b32.xlu1 %v690_v17, %s2346_s24 }
 0x2d0   : > { %747 = vrot.lane.b32.xlu0 %v696_v18, %s2343_s23  ;;  %v2115_v18 = vld [vmem:[%s2983_s1 + $0x4] sm:$0xf] }
 0x2d2   : > { %759 = vrot.lane.b32.xlu1 %v692_v21, %s2346_s24 }
 0x2d4   : > { %757 = vrot.lane.b32.xlu0 %v691_v23, %s2346_s24 }
 0x2d6   : > { %398 = vrot.lane.b32.xlu1 %v2406_v22, %s2339_s17 }
 0x2d8   : > { %817 = vperm.xlu0 %2310, %v2116_v29  }
 0x2da   : > { %402 = vrot.lane.b32.xlu1 %v2397_v19, %s2339_s17 }
 0x2dc   : > { %400 = vrot.lane.b32.xlu0 %v2418_v24, %s2339_s17 }
 0x318   : > { %v708_v30 = vpop.permute.xlu1 %707 }
 0x31a   : > { %v700_v31 = vpop.permute.xlu0 %699 }
 0x31c   : > { %v724_v32 = vpop.permute.xlu1 %723 }
 0x31e   : > { %v712_v33 = vpop.permute.xlu0 %711 }
 0x320   : > { %v740_v34 = vpop.permute.xlu1 %739 }
 0x322   : > { %v716_v35 = vpop.permute.xlu0 %715 }
 0x324   : > { %v710_v36 = vpop.permute.xlu1 %709 }
 0x325   : > { %v714_v49 = vsel %vm441_vm1, %v710_v36, %v712_v33  ;;  %v713_v52 = vsel %vm441_vm1, %v708_v30, %v710_v36 }
 0x326   : > { %v728_v37 = vpop.permute.xlu0 %727 }
 0x328   : > { %v726_v38 = vpop.permute.xlu1 %725 }
 0x329   : > { %v730_v58 = vsel %vm404_vm4, %v726_v38, %v728_v37  ;;  %v729_v61 = vsel %vm404_vm4, %v724_v32, %v726_v38 }
 0x32a   : > { %v732_v39 = vpop.permute.xlu0 %731 }
 0x32c   : > { %v742_v40 = vpop.permute.xlu1 %741 }
 0x32d   : > { %v745_v11 = vsel %vm477_vm7, %v740_v34, %v742_v40 }
 0x32e   : > { %v744_v41 = vpop.permute.xlu0 %743 }
 0x32f   : > { %v746_v3 = vsel %vm477_vm7, %v742_v40, %v744_v41 }
 0x330   : > { %v704_v22 = vpop.permute.xlu1 %703 }
 0x331   : > { %v773_v42 = vsel %vm498_vm15, %v692_v21, %v704_v22 }
 0x332   : > { %v702_v43 = vpop.permute.xlu0 %701  ;;  %2199 = vmatpush3.bf16.msra.mxu1 %v773_v42 }
 0x333   : > { %v705_v19 = vsel %vm432_vm0, %v700_v31, %v702_v43  ;;  %v706_v24 = vsel %vm432_vm0, %v702_v43, %v704_v22  ;;  %2200 = vmatprep.subr.bf16.mxu1 %v2320_v0 }
 0x334   : > { %v718_v44 = vpop.permute.xlu1 %717  ;;  %v769_v45 = vsel %vm498_vm15, %v691_v23, %v706_v24  ;;  %v765_v46 = vsel %vm498_vm15, %v690_v17, %v705_v19 }
 0x335   : > { %832 = vmatprep.subr.bf16.mxu0 %v769_v45  ;;  %v721_v47 = vsel %vm450_vm2, %v716_v35, %v718_v44 }
 0x336   : > { %v720_v48 = vpop.permute.xlu0 %719  ;;  %833 = vmatpush1.bf16.msra.mxu0 %v765_v46  ;;  %v777_v55 = vsel %vm498_vm15, %v713_v52, %v721_v47 }
 0x337   : > { %v722_v50 = vsel %vm450_vm2, %v718_v44, %v720_v48  ;;  %v785_v51 = vsel %vm498_vm15, %v712_v33, %v720_v48 }
 0x338   : > { %2201 = vmatpush3.bf16.msra.mxu1 %v785_v51  ;;  %v734_v53 = vpop.permute.xlu1 %733  ;;  %v781_v54 = vsel %vm498_vm15, %v714_v49, %v722_v50 }
 0x339   : > { %834 = vmatprep.subr.bf16.mxu0 %v781_v54  ;;  %2202 = vmatprep.subr.bf16.mxu1 %v2320_v0  ;;  %v737_v56 = vsel %vm468_vm5, %v732_v39, %v734_v53 }
 0x33a   : > { %v736_v57 = vpop.permute.xlu0 %735  ;;  %835 = vmatpush1.bf16.msra.mxu0 %v777_v55  ;;  %v789_v1 = vsel %vm498_vm15, %v729_v61, %v737_v56  ;;  %v2121_v61 = vld [vmem:[%s2984_s2 + $0x10] sm:$0xff] }
 0x33b   : > { %v738_v59 = vsel %vm468_vm5, %v734_v53, %v736_v57  ;;  %v797_v60 = vsel %vm498_vm15, %v728_v37, %v736_v57 }
 0x33c   : > { %2203 = vmatpush3.bf16.msra.mxu1 %v797_v60  ;;  %v750_v62 = vpop.permute.xlu1 %749  ;;  %v793_v63 = vsel %vm498_vm15, %v730_v58, %v738_v59 }
 0x33d   : > { %836 = vmatprep.subr.bf16.mxu0 %v793_v63  ;;  %2204 = vmatprep.subr.bf16.mxu1 %v2320_v0 }
 0x33e   : > { %v752_v2 = vpop.permute.xlu0 %751  ;;  %837 = vmatpush1.bf16.msra.mxu0 %v789_v1 }
 0x33f   : > { %v754_v4 = vsel %vm2991_vm6, %v750_v62, %v752_v2  ;;  %v809_v5 = vsel %vm498_vm15, %v744_v41, %v752_v2 }
 0x340   : > { %2205 = vmatpush3.bf16.msra.mxu1 %v809_v5  ;;  %v756_v6 = vpop.permute.xlu1 %755  ;;  %v805_v9 = vsel %vm498_vm15, %v746_v3, %v754_v4 }
 0x341   : > { %838 = vmatprep.subr.bf16.mxu0 %v805_v9  ;;  %2206 = vmatprep.subr.bf16.mxu1 %v2320_v0 }
 0x342   : > { %v748_v10 = vpop.permute.xlu0 %747 }
 0x343   : > { %v753_v12 = vsel %vm2991_vm6, %v748_v10, %v750_v62  ;;  %vm2998_vm6 = vmmov %vm2996_vm3 }
 0x344   : > { %v760_v13 = vpop.permute.xlu1 %759  ;;  %v801_v15 = vsel %vm498_vm15, %v745_v11, %v753_v12 }
 0x345   : > { %839 = vmatpush1.bf16.msra.mxu0 %v801_v15  ;;  %v830_v16 = vsel %vm498_vm15, %v760_v13, 0 }
 0x346   : > { %v758_v17 = vpop.permute.xlu0 %757  ;;  %2207 = vmatpush3.bf16.msra.mxu1 %v830_v16 }
 0x347   : > { %v761_v20 = vsel %vm495_vm8, %v756_v6, %v758_v17  ;;  %v762_v21 = vsel %vm495_vm8, %v758_v17, %v760_v13  ;;  %2212 = vmatprep.subr.bf16.mxu1 %v2320_v0 }
 0x348   : > { %2117 = vmatprep.subr.msk.bf16.mxu0 %vm498_vm15, %v762_v21  ;;  %v399_v25 = vpop.permute.xlu1 %398  ;;  %v824_v23 = vsel %vm498_vm15, %v761_v20, 0 }
 0x349   : > { %841 = vmatpush1.bf16.msra.mxu0 %v824_v23  ;;  %2209 = vmatmul.mubr.msk.bf16.vlgmr.msra.gmra.mrb[4].mxu1 %vm2996_vm3, %v2115_v18 }
 0x34a   : > { %2222 = vmatprep.mubr.msk.bf16.mxu1 %vm2997_vm11, %v2320_v0 }
 0x34c   : > { %2118 = vmatmul.mubr.msk.bf16.vlgmr.msra.gmra.mrb[4].mxu0 %vm2998_vm6, %v2115_v18  ;;  %v403_v26 = vpop.permute.xlu1 %402  ;;  %vm2999_vm6 = vcmask 744448  }
 0x34d   : > { %413 = vst.msk [vmem:[#allocation3 + $0x10] sm:$0xff] %vm412_vm9, %v403_v26  ;;  %1119 = vmatprep.mubr.bf16.mxu0 %v2344_v28  ;;  %vm3000_vm3 = vmmov %vm2999_vm6 }
 0x354   : > { %v918_v37 = vld [vmem:[#allocation3 + $0x10] sm:$0xff] }
 0x357   : > { %v818_v27 = vpop.permute.xlu0 %817 }
 0x35b   : > { %v401_v36 = vpop.permute.xlu0 %400 }
 0x35c   : > { %v405_v19 = vsel %vm404_vm4, %v399_v25, %v401_v36  ;;  %v406_v44 = vsel %vm404_vm4, %v401_v36, %v403_v26 }
 0x41c   : > { %v907_v29 = vpop.f32.mrb[4].mxu1 }
 0x41d   : > { %v908_v30 = vadd.f32 %v907_v29, %v818_v27  ;;  %v2210_v31 = vpop.f32.mrb[5].mxu1 }
 0x41e   : > { %v910_v32 = vpop.f32.mrb[6].mxu1 }
 0x41f   : > { %v915_v33 = vmax.f32 %v908_v30, 0.0  ;;  %v866_v34 = vpop.f32.mrb[4].mxu0  ;;  %v2211_v35 = vpop.f32.mrb[7].mxu1 }
 0x420   : > { %v867_v38 = vadd.f32 %v866_v34, %v818_v27  ;;  %v868_v39 = vpop.f32.mrb[5].mxu0 }
 0x421   : > { %v921_v40 = vadd.f32 %v918_v37, %v915_v33  ;;  %v869_v41 = vadd.f32 %v868_v39, %v818_v27  ;;  %v870_v22 = vpop.f32.mrb[6].mxu0 }
 0x422   : > { %v913_v42 = vmax.f32 %v867_v38, 0.0  ;;  %v871_v43 = vpop.f32.mrb[7].mxu0 }
 0x423   : > { %924 = vst.msk [vmem:[#allocation3 + $0x10] sm:$0xff] %vm412_vm9, %v921_v40  ;;  %v914_v24 = vmax.f32 %v869_v41, 0.0 }
 0x424   : > { %v2620_v45 = vadd.f32 %v913_v42, %v405_v19 }
 0x425   : > { %v2622_v46 = vadd.f32 %v914_v24, %v406_v44 }
 0x426   : > { %928 = vrot.lane.b32.xlu0 %v2620_v45, %s2322_s25 }
 0x427   : > { %930 = vrot.lane.b32.xlu1 %v2622_v46, %s2322_s25 }
 0x42a   : > { %932 = vrot.lane.b32.xlu0 %v921_v40, %s2322_s25 }
 0x498   : > { %v929_v47 = vpop.permute.xlu0 %928 }
 0x499   : > { %939 = vst.msk [vmem:[#allocation2] sm:$0xff] %vm2518_vm13, %v929_v47  ;;  %v931_v48 = vpop.permute.xlu1 %930 }
 0x49a   : > { %v934_v49 = vsel %vm660_vm12, %v929_v47, %v931_v48 }
 0x49b   : > { %940 = vst.msk [vmem:[#allocation2 + $0x8] sm:$0xff] %vm678_vm14, %v934_v49 }
 0x49c   : > { %v933_v50 = vpop.permute.xlu0 %932 }
 0x49d   : > { %v935_v51 = vsel %vm660_vm12, %v931_v48, %v933_v50 }
 0x49e   : > { %941 = vst.msk [vmem:[#allocation2 + $0x10] sm:$0xff] %vm2532_vm10, %v935_v51 }
 0x4a0   : > { %v942_v52 = vld [vmem:[#allocation2] sm:$0xff] }
 0x4a1   : > { %v945_v53 = vpack.c.bf16 %v942_v52, %v942_v52 }
 0x4a2   : > { %v943_v57 = vld [vmem:[#allocation2 + $0x8] sm:$0xff] }
 0x4a3   : > { %962 = vrot.lane.b32.xlu0 %v945_v53, %s2337_s15  ;;  %v951_v54 = vrot.slane %v945_v53, 4  ;;  %v946_v58 = vpack.c.bf16 %v943_v57, %v943_v57 }
 0x4a5   : > { %954 = vrot.lane.b32.xlu1 %v951_v54, %s2338_s16  ;;  %v944_v55 = vld [vmem:[#allocation2 + $0x10] sm:$0xff]  ;;  %v952_v60 = vrot.slane %v946_v58, 4 }
 0x4a6   : > { %v947_v56 = vpack.c.bf16 %v944_v55, %v944_v55 }
 0x4a7   : > { %978 = vrot.lane.b32.xlu0 %v945_v53, %s2339_s17 }
 0x4a8   : > { %v953_v59 = vrot.slane %v947_v56, 4 }
 0x4a9   : > { %966 = vrot.lane.b32.xlu1 %v947_v56, %s2337_s15 }
 0x4ab   : > { %994 = vrot.lane.b32.xlu0 %v945_v53, %s2342_s22 }
 0x4ad   : > { %970 = vrot.lane.b32.xlu1 %v951_v54, %s2340_s20 }
 0x4af   : > { %964 = vrot.lane.b32.xlu0 %v946_v58, %s2337_s15 }
 0x4b1   : > { %982 = vrot.lane.b32.xlu1 %v947_v56, %s2339_s17 }
 0x4b3   : > { %980 = vrot.lane.b32.xlu0 %v946_v58, %s2339_s17 }
 0x4b5   : > { %986 = vrot.lane.b32.xlu1 %v951_v54, %s2341_s21 }
 0x4b7   : > { %996 = vrot.lane.b32.xlu0 %v946_v58, %s2342_s22 }
 0x4b9   : > { %998 = vrot.lane.b32.xlu1 %v947_v56, %s2342_s22 }
 0x4bb   : > { %958 = vrot.lane.b32.xlu0 %v953_v59, %s2338_s16 }
 0x4bd   : > { %956 = vrot.lane.b32.xlu1 %v952_v60, %s2338_s16 }
 0x4bf   : > { %972 = vrot.lane.b32.xlu0 %v952_v60, %s2340_s20 }
 0x4c1   : > { %974 = vrot.lane.b32.xlu1 %v953_v59, %s2340_s20 }
 0x4c3   : > { %988 = vrot.lane.b32.xlu0 %v952_v60, %s2341_s21 }
 0x4c5   : > { %990 = vrot.lane.b32.xlu1 %v953_v59, %s2341_s21 }
 0x4c7   : > { %1004 = vrot.lane.b32.xlu0 %v952_v60, %s2343_s23 }
 0x4c9   : > { %1006 = vrot.lane.b32.xlu1 %v953_v59, %s2343_s23 }
 0x4cb   : > { %1010 = vrot.lane.b32.xlu0 %v945_v53, %s2346_s24 }
 0x4cd   : > { %1002 = vrot.lane.b32.xlu1 %v951_v54, %s2343_s23 }
 0x4cf   : > { %1014 = vrot.lane.b32.xlu0 %v947_v56, %s2346_s24 }
 0x4d1   : > { %1012 = vrot.lane.b32.xlu1 %v946_v58, %s2346_s24 }
 0x4d5   : > { %1072 = vperm.xlu1 %2311, %v2121_v61  }
 0x515   : > { %v963_v62 = vpop.permute.xlu0 %962 }
 0x517   : > { %v955_v63 = vpop.permute.xlu1 %954 }
 0x519   : > { %v979_v1 = vpop.permute.xlu0 %978 }
 0x51b   : > { %v967_v2 = vpop.permute.xlu1 %966 }
 0x51d   : > { %v995_v3 = vpop.permute.xlu0 %994 }
 0x51f   : > { %v971_v4 = vpop.permute.xlu1 %970 }
 0x521   : > { %v965_v5 = vpop.permute.xlu0 %964 }
 0x522   : > { %v969_v27 = vsel %vm441_vm1, %v965_v5, %v967_v2  ;;  %v968_v31 = vsel %vm441_vm1, %v963_v62, %v965_v5 }
 0x523   : > { %v983_v6 = vpop.permute.xlu1 %982 }
 0x525   : > { %v981_v9 = vpop.permute.xlu0 %980 }
 0x526   : > { %v985_v37 = vsel %vm404_vm4, %v981_v9, %v983_v6  ;;  %v984_v40 = vsel %vm404_vm4, %v979_v1, %v981_v9 }
 0x527   : > { %v987_v10 = vpop.permute.xlu1 %986 }
 0x529   : > { %v997_v11 = vpop.permute.xlu0 %996 }
 0x52a   : > { %v1000_v50 = vsel %vm477_vm7, %v995_v3, %v997_v11 }
 0x52b   : > { %v999_v12 = vpop.permute.xlu1 %998 }
 0x52c   : > { %v1001_v19 = vsel %vm477_vm7, %v997_v11, %v999_v12 }
 0x52d   : > { %v959_v13 = vpop.permute.xlu0 %958 }
 0x52e   : > { %v1028_v15 = vsel %vm498_vm15, %v947_v56, %v959_v13  ;;  %v2120_v56 = vld [vmem:[%s2983_s1 + $0x8] sm:$0xf] }
 0x52f   : > { %2213 = vmatpush3.bf16.msra.mxu1 %v1028_v15  ;;  %v957_v16 = vpop.permute.xlu1 %956 }
 0x530   : > { %v960_v17 = vsel %vm432_vm0, %v955_v63, %v957_v16  ;;  %v961_v18 = vsel %vm432_vm0, %v957_v16, %v959_v13  ;;  %2214 = vmatprep.subr.bf16.mxu1 %v2320_v0 }
 0x531   : > { %v973_v20 = vpop.permute.xlu0 %972  ;;  %v1024_v21 = vsel %vm498_vm15, %v946_v58, %v961_v18  ;;  %v1020_v25 = vsel %vm498_vm15, %v945_v53, %v960_v17 }
 0x532   : > { %1087 = vmatprep.subr.bf16.mxu0 %v1024_v21  ;;  %v976_v23 = vsel %vm450_vm2, %v971_v4, %v973_v20 }
 0x533   : > { %1088 = vmatpush1.bf16.msra.mxu0 %v1020_v25  ;;  %v975_v26 = vpop.permute.xlu1 %974  ;;  %v1032_v34 = vsel %vm498_vm15, %v968_v31, %v976_v23 }
 0x534   : > { %v977_v29 = vsel %vm450_vm2, %v973_v20, %v975_v26  ;;  %v1040_v30 = vsel %vm498_vm15, %v967_v2, %v975_v26 }
 0x535   : > { %v989_v32 = vpop.permute.xlu0 %988  ;;  %2215 = vmatpush3.bf16.msra.mxu1 %v1040_v30  ;;  %v1036_v33 = vsel %vm498_vm15, %v969_v27, %v977_v29 }
 0x536   : > { %1089 = vmatprep.subr.bf16.mxu0 %v1036_v33  ;;  %2216 = vmatprep.subr.bf16.mxu1 %v2320_v0  ;;  %v992_v35 = vsel %vm468_vm5, %v987_v10, %v989_v32  ;;  %v2126_v33 = vld [vmem:[%s2984_s2 + $0x18] sm:$0xff] }
 0x537   : > { %1090 = vmatpush1.bf16.msra.mxu0 %v1032_v34  ;;  %v991_v36 = vpop.permute.xlu1 %990  ;;  %v1044_v42 = vsel %vm498_vm15, %v984_v40, %v992_v35 }
 0x538   : > { %v993_v38 = vsel %vm468_vm5, %v989_v32, %v991_v36  ;;  %v1052_v39 = vsel %vm498_vm15, %v983_v6, %v991_v36 }
 0x539   : > { %v1005_v41 = vpop.permute.xlu0 %1004  ;;  %2217 = vmatpush3.bf16.msra.mxu1 %v1052_v39  ;;  %v1048_v22 = vsel %vm498_vm15, %v985_v37, %v993_v38 }
 0x53a   : > { %1091 = vmatprep.subr.bf16.mxu0 %v1048_v22  ;;  %2218 = vmatprep.subr.bf16.mxu1 %v2320_v0 }
 0x53b   : > { %1092 = vmatpush1.bf16.msra.mxu0 %v1044_v42  ;;  %v1007_v43 = vpop.permute.xlu1 %1006 }
 0x53c   : > { %v1009_v24 = vsel %vm2999_vm6, %v1005_v41, %v1007_v43  ;;  %v1064_v44 = vsel %vm498_vm15, %v999_v12, %v1007_v43  ;;  %vm3001_vm6 = vcmask 588800  }
 0x53d   : > { %v1011_v47 = vpop.permute.xlu0 %1010  ;;  %2219 = vmatpush3.bf16.msra.mxu1 %v1064_v44  ;;  %v1060_v48 = vsel %vm498_vm15, %v1001_v19, %v1009_v24 }
 0x53e   : > { %1093 = vmatprep.subr.bf16.mxu0 %v1060_v48  ;;  %2220 = vmatprep.subr.bf16.mxu1 %v2320_v0 }
 0x53f   : > { %v1003_v49 = vpop.permute.xlu1 %1002 }
 0x540   : > { %v1008_v51 = vsel %vm3000_vm3, %v1003_v49, %v1005_v41  ;;  %vm3002_vm3 = vmmov %vm3001_vm6 }
 0x541   : > { %v1015_v52 = vpop.permute.xlu0 %1014  ;;  %v1056_v53 = vsel %vm498_vm15, %v1000_v50, %v1008_v51 }
 0x542   : > { %v1085_v54 = vsel %vm498_vm15, %v1015_v52, 0  ;;  %1094 = vmatpush1.bf16.msra.mxu0 %v1056_v53 }
 0x543   : > { %2221 = vmatpush3.bf16.msra.mxu1 %v1085_v54  ;;  %v1013_v55 = vpop.permute.xlu1 %1012 }
 0x544   : > { %v1016_v57 = vsel %vm495_vm8, %v1011_v47, %v1013_v55  ;;  %v1017_v58 = vsel %vm495_vm8, %v1013_v55, %v1015_v52  ;;  %2226 = vmatprep.subr.bf16.mxu1 %v2320_v0 }
 0x545   : > { %v1079_v59 = vsel %vm498_vm15, %v1016_v57, 0  ;;  %2122 = vmatprep.subr.msk.bf16.mxu0 %vm498_vm15, %v1017_v58 }
 0x546   : > { %1096 = vmatpush1.bf16.msra.mxu0 %v1079_v59  ;;  %2223 = vmatmul.mubr.msk.bf16.vlgmr.msra.gmra.mrb[8].mxu1 %vm3001_vm6, %v2120_v56  ;;  %vm3003_vm6 = vcmask 744448  }
 0x547   : > { %2236 = vmatprep.mubr.msk.bf16.mxu1 %vm2997_vm11, %v2320_v0 }
 0x549   : > { %2123 = vmatmul.mubr.msk.bf16.vlgmr.msra.gmra.mrb[8].mxu0 %vm3002_vm3, %v2120_v56  ;;  %vm3004_vm3 = vmmov %vm3003_vm6 }
 0x54a   : > { %1365 = vmatprep.mubr.bf16.mxu0 %v2344_v28 }
 0x554   : > { %v1073_v61 = vpop.permute.xlu1 %1072 }
 0x619   : > { %v1162_v60 = vpop.f32.mrb[8].mxu1 }
 0x61a   : > { %v2224_v62 = vpop.f32.mrb[9].mxu1  ;;  %v1163_v9 = vadd.f32 %v1162_v60, %v1073_v61 }
 0x61b   : > { %v1165_v63 = vpop.f32.mrb[10].mxu1 }
 0x61c   : > { %v1121_v1 = vpop.f32.mrb[8].mxu0  ;;  %v2225_v2 = vpop.f32.mrb[11].mxu1  ;;  %v1170_v13 = vmax.f32 %v1163_v9, 0.0 }
 0x61d   : > { %v1122_v3 = vadd.f32 %v1121_v1, %v1073_v61  ;;  %v1123_v4 = vpop.f32.mrb[9].mxu0 }
 0x61e   : > { %v1124_v5 = vadd.f32 %v1123_v4, %v1073_v61  ;;  %v1125_v6 = vpop.f32.mrb[10].mxu0 }
 0x61f   : > { %v1168_v10 = vmax.f32 %v1122_v3, 0.0  ;;  %v1126_v11 = vpop.f32.mrb[11].mxu0 }
 0x620   : > { %v1169_v12 = vmax.f32 %v1124_v5, 0.0 }
 0x621   : > { %1174 = vrot.lane.b32.xlu0 %v1168_v10, %s2322_s25 }
 0x622   : > { %1176 = vrot.lane.b32.xlu1 %v1169_v12, %s2322_s25 }
 0x625   : > { %1178 = vrot.lane.b32.xlu0 %v1170_v13, %s2322_s25 }
 0x693   : > { %v1175_v15 = vpop.permute.xlu0 %1174 }
 0x694   : > { %1185 = vst.msk [vmem:[#allocation2] sm:$0xff] %vm2518_vm13, %v1175_v15  ;;  %v1177_v16 = vpop.permute.xlu1 %1176 }
 0x695   : > { %v1180_v17 = vsel %vm660_vm12, %v1175_v15, %v1177_v16 }
 0x696   : > { %1186 = vst.msk [vmem:[#allocation2 + $0x8] sm:$0xff] %vm678_vm14, %v1180_v17 }
 0x697   : > { %v1179_v18 = vpop.permute.xlu0 %1178 }
 0x698   : > { %v1181_v20 = vsel %vm660_vm12, %v1177_v16, %v1179_v18 }
 0x699   : > { %1187 = vst.msk [vmem:[#allocation2 + $0x10] sm:$0xff] %vm2532_vm10, %v1181_v20 }
 0x69b   : > { %v1188_v21 = vld [vmem:[#allocation2] sm:$0xff] }
 0x69c   : > { %v1191_v25 = vpack.c.bf16 %v1188_v21, %v1188_v21 }
 0x69d   : > { %v1189_v29 = vld [vmem:[#allocation2 + $0x8] sm:$0xff] }
 0x69e   : > { %1208 = vrot.lane.b32.xlu0 %v1191_v25, %s2337_s15  ;;  %v1197_v23 = vrot.slane %v1191_v25, 4  ;;  %v1192_v30 = vpack.c.bf16 %v1189_v29, %v1189_v29 }
 0x6a0   : > { %1200 = vrot.lane.b32.xlu1 %v1197_v23, %s2338_s16  ;;  %v1190_v26 = vld [vmem:[#allocation2 + $0x10] sm:$0xff]  ;;  %v1198_v32 = vrot.slane %v1192_v30, 4 }
 0x6a1   : > { %v1193_v27 = vpack.c.bf16 %v1190_v26, %v1190_v26 }
 0x6a2   : > { %1224 = vrot.lane.b32.xlu0 %v1191_v25, %s2339_s17 }
 0x6a3   : > { %v1199_v31 = vrot.slane %v1193_v27, 4 }
 0x6a4   : > { %1212 = vrot.lane.b32.xlu1 %v1193_v27, %s2337_s15 }
 0x6a6   : > { %1240 = vrot.lane.b32.xlu0 %v1191_v25, %s2342_s22 }
 0x6a8   : > { %1216 = vrot.lane.b32.xlu1 %v1197_v23, %s2340_s20 }
 0x6aa   : > { %1210 = vrot.lane.b32.xlu0 %v1192_v30, %s2337_s15 }
 0x6ac   : > { %1228 = vrot.lane.b32.xlu1 %v1193_v27, %s2339_s17 }
 0x6ae   : > { %1226 = vrot.lane.b32.xlu0 %v1192_v30, %s2339_s17 }
 0x6b0   : > { %1232 = vrot.lane.b32.xlu1 %v1197_v23, %s2341_s21 }
 0x6b2   : > { %1242 = vrot.lane.b32.xlu0 %v1192_v30, %s2342_s22 }
 0x6b4   : > { %1244 = vrot.lane.b32.xlu1 %v1193_v27, %s2342_s22 }
 0x6b6   : > { %1204 = vrot.lane.b32.xlu0 %v1199_v31, %s2338_s16 }
 0x6b8   : > { %1202 = vrot.lane.b32.xlu1 %v1198_v32, %s2338_s16 }
 0x6ba   : > { %1218 = vrot.lane.b32.xlu0 %v1198_v32, %s2340_s20 }
 0x6bc   : > { %1220 = vrot.lane.b32.xlu1 %v1199_v31, %s2340_s20 }
 0x6be   : > { %1234 = vrot.lane.b32.xlu0 %v1198_v32, %s2341_s21 }
 0x6c0   : > { %1236 = vrot.lane.b32.xlu1 %v1199_v31, %s2341_s21 }
 0x6c2   : > { %1250 = vrot.lane.b32.xlu0 %v1198_v32, %s2343_s23 }
 0x6c4   : > { %1252 = vrot.lane.b32.xlu1 %v1199_v31, %s2343_s23 }
 0x6c6   : > { %1256 = vrot.lane.b32.xlu0 %v1191_v25, %s2346_s24 }
 0x6c8   : > { %1248 = vrot.lane.b32.xlu1 %v1197_v23, %s2343_s23 }
 0x6ca   : > { %1260 = vrot.lane.b32.xlu0 %v1193_v27, %s2346_s24 }
 0x6cc   : > { %1258 = vrot.lane.b32.xlu1 %v1192_v30, %s2346_s24 }
 0x6d0   : > { %1318 = vperm.xlu1 %2311, %v2126_v33  }
 0x710   : > { %v1209_v34 = vpop.permute.xlu0 %1208 }
 0x712   : > { %v1201_v35 = vpop.permute.xlu1 %1200 }
 0x714   : > { %v1225_v36 = vpop.permute.xlu0 %1224 }
 0x716   : > { %v1213_v37 = vpop.permute.xlu1 %1212 }
 0x718   : > { %v1241_v38 = vpop.permute.xlu0 %1240 }
 0x71a   : > { %v1217_v39 = vpop.permute.xlu1 %1216 }
 0x71c   : > { %v1211_v40 = vpop.permute.xlu0 %1210 }
 0x71d   : > { %v1215_v55 = vsel %vm441_vm1, %v1211_v40, %v1213_v37  ;;  %v1214_v58 = vsel %vm441_vm1, %v1209_v34, %v1211_v40  ;;  %v1419_v40 = vld [vmem:[#allocation3 + $0x10] sm:$0xff] }
 0x71e   : > { %v1229_v41 = vpop.permute.xlu1 %1228 }
 0x720   : > { %v1227_v22 = vpop.permute.xlu0 %1226 }
 0x721   : > { %v1231_v1 = vsel %vm404_vm4, %v1227_v22, %v1229_v41  ;;  %v1230_v4 = vsel %vm404_vm4, %v1225_v36, %v1227_v22 }
 0x722   : > { %v1233_v42 = vpop.permute.xlu1 %1232 }
 0x724   : > { %v1243_v43 = vpop.permute.xlu0 %1242 }
 0x725   : > { %v1246_v18 = vsel %vm477_vm7, %v1241_v38, %v1243_v43 }
 0x726   : > { %v1245_v19 = vpop.permute.xlu1 %1244 }
 0x727   : > { %v1247_v11 = vsel %vm477_vm7, %v1243_v43, %v1245_v19 }
 0x728   : > { %v1205_v24 = vpop.permute.xlu0 %1204 }
 0x729   : > { %v1274_v44 = vsel %vm498_vm15, %v1193_v27, %v1205_v24  ;;  %v2125_v27 = vld [vmem:[%s2983_s1 + $0xc] sm:$0xf] }
 0x72a   : > { %v1203_v47 = vpop.permute.xlu1 %1202  ;;  %2227 = vmatpush3.bf16.msra.mxu1 %v1274_v44 }
 0x72b   : > { %v1206_v48 = vsel %vm432_vm0, %v1201_v35, %v1203_v47  ;;  %v1207_v49 = vsel %vm432_vm0, %v1203_v47, %v1205_v24  ;;  %2228 = vmatprep.subr.bf16.mxu1 %v2320_v0 }
 0x72c   : > { %v1219_v50 = vpop.permute.xlu0 %1218  ;;  %v1270_v51 = vsel %vm498_vm15, %v1192_v30, %v1207_v49  ;;  %v1266_v52 = vsel %vm498_vm15, %v1191_v25, %v1206_v48 }
 0x72d   : > { %1333 = vmatprep.subr.bf16.mxu0 %v1270_v51  ;;  %v1222_v53 = vsel %vm450_vm2, %v1217_v39, %v1219_v50 }
 0x72e   : > { %v1221_v54 = vpop.permute.xlu1 %1220  ;;  %1334 = vmatpush1.bf16.msra.mxu0 %v1266_v52  ;;  %v1278_v61 = vsel %vm498_vm15, %v1214_v58, %v1222_v53 }
 0x72f   : > { %v1223_v56 = vsel %vm450_vm2, %v1219_v50, %v1221_v54  ;;  %v1286_v57 = vsel %vm498_vm15, %v1213_v37, %v1221_v54 }
 0x730   : > { %2229 = vmatpush3.bf16.msra.mxu1 %v1286_v57  ;;  %v1235_v59 = vpop.permute.xlu0 %1234  ;;  %v1282_v60 = vsel %vm498_vm15, %v1215_v55, %v1223_v56 }
 0x731   : > { %1335 = vmatprep.subr.bf16.mxu0 %v1282_v60  ;;  %2230 = vmatprep.subr.bf16.mxu1 %v2320_v0  ;;  %v1238_v62 = vsel %vm468_vm5, %v1233_v42, %v1235_v59 }
 0x732   : > { %v1237_v63 = vpop.permute.xlu1 %1236  ;;  %1336 = vmatpush1.bf16.msra.mxu0 %v1278_v61  ;;  %v1290_v9 = vsel %vm498_vm15, %v1230_v4, %v1238_v62  ;;  %v2131_v62 = vld [vmem:[%s2984_s2 + $0x20] sm:$0xff] }
 0x733   : > { %v1239_v2 = vsel %vm468_vm5, %v1235_v59, %v1237_v63  ;;  %v1298_v3 = vsel %vm498_vm15, %v1229_v41, %v1237_v63 }
 0x734   : > { %2231 = vmatpush3.bf16.msra.mxu1 %v1298_v3  ;;  %v1251_v5 = vpop.permute.xlu0 %1250  ;;  %v1294_v6 = vsel %vm498_vm15, %v1231_v1, %v1239_v2 }
 0x735   : > { %1337 = vmatprep.subr.bf16.mxu0 %v1294_v6  ;;  %2232 = vmatprep.subr.bf16.mxu1 %v2320_v0 }
 0x736   : > { %v1253_v10 = vpop.permute.xlu1 %1252  ;;  %1338 = vmatpush1.bf16.msra.mxu0 %v1290_v9 }
 0x737   : > { %v1255_v12 = vsel %vm3003_vm6, %v1251_v5, %v1253_v10  ;;  %v1310_v13 = vsel %vm498_vm15, %v1245_v19, %v1253_v10  ;;  %vm3005_vm6 = vcmask 588800  }
 0x738   : > { %2233 = vmatpush3.bf16.msra.mxu1 %v1310_v13  ;;  %v1257_v15 = vpop.permute.xlu0 %1256  ;;  %v1306_v16 = vsel %vm498_vm15, %v1247_v11, %v1255_v12 }
 0x739   : > { %1339 = vmatprep.subr.bf16.mxu0 %v1306_v16  ;;  %2234 = vmatprep.subr.bf16.mxu1 %v2320_v0 }
 0x73a   : > { %v1249_v17 = vpop.permute.xlu1 %1248 }
 0x73b   : > { %v1254_v20 = vsel %vm3004_vm3, %v1249_v17, %v1251_v5  ;;  %vm3006_vm3 = vmmov %vm3005_vm6 }
 0x73c   : > { %v1261_v21 = vpop.permute.xlu0 %1260  ;;  %v1302_v25 = vsel %vm498_vm15, %v1246_v18, %v1254_v20 }
 0x73d   : > { %v1331_v23 = vsel %vm498_vm15, %v1261_v21, 0  ;;  %1340 = vmatpush1.bf16.msra.mxu0 %v1302_v25 }
 0x73e   : > { %v1259_v26 = vpop.permute.xlu1 %1258  ;;  %2235 = vmatpush3.bf16.msra.mxu1 %v1331_v23 }
 0x73f   : > { %v1262_v29 = vsel %vm495_vm8, %v1257_v15, %v1259_v26  ;;  %v1263_v30 = vsel %vm495_vm8, %v1259_v26, %v1261_v21  ;;  %2240 = vmatprep.subr.bf16.mxu1 %v2320_v0 }
 0x740   : > { %v1325_v31 = vsel %vm498_vm15, %v1262_v29, 0  ;;  %2127 = vmatprep.subr.msk.bf16.mxu0 %vm498_vm15, %v1263_v30 }
 0x741   : > { %1342 = vmatpush1.bf16.msra.mxu0 %v1325_v31  ;;  %2237 = vmatmul.mubr.msk.bf16.vlgmr.msra.gmra.mrb[12].mxu1 %vm3005_vm6, %v2125_v27  ;;  %vm3007_vm6 = vcmask 744448  }
 0x742   : > { %2250 = vmatprep.mubr.msk.bf16.mxu1 %vm2997_vm11, %v2320_v0 }
 0x744   : > { %2128 = vmatmul.mubr.msk.bf16.vlgmr.msra.gmra.mrb[12].mxu0 %vm3006_vm3, %v2125_v27  ;;  %vm3008_vm3 = vmmov %vm3007_vm6 }
 0x745   : > { %1620 = vmatprep.mubr.bf16.mxu0 %v2344_v28 }
 0x74f   : > { %v1319_v32 = vpop.permute.xlu1 %1318 }
 0x814   : > { %v1408_v33 = vpop.f32.mrb[12].mxu1 }
 0x815   : > { %v1409_v34 = vadd.f32 %v1408_v33, %v1319_v32  ;;  %v2238_v35 = vpop.f32.mrb[13].mxu1 }
 0x816   : > { %v1411_v36 = vpop.f32.mrb[14].mxu1 }
 0x817   : > { %v1416_v37 = vmax.f32 %v1409_v34, 0.0  ;;  %v1367_v38 = vpop.f32.mrb[12].mxu0  ;;  %v2239_v39 = vpop.f32.mrb[15].mxu1 }
 0x818   : > { %v1368_v41 = vadd.f32 %v1367_v38, %v1319_v32  ;;  %v1369_v22 = vpop.f32.mrb[13].mxu0 }
 0x819   : > { %v1422_v42 = vadd.f32 %v1419_v40, %v1416_v37  ;;  %v1370_v43 = vadd.f32 %v1369_v22, %v1319_v32  ;;  %v1371_v19 = vpop.f32.mrb[14].mxu0 }
 0x81a   : > { %v1414_v24 = vmax.f32 %v1368_v41, 0.0  ;;  %v1372_v44 = vpop.f32.mrb[15].mxu0 }
 0x81b   : > { %1425 = vst.msk [vmem:[#allocation3 + $0x10] sm:$0xff] %vm412_vm9, %v1422_v42  ;;  %v1415_v47 = vmax.f32 %v1370_v43, 0.0 }
 0x81c   : > { %v2792_v48 = vadd.f32 %v1414_v24, %v2620_v45 }
 0x81d   : > { %v2795_v49 = vadd.f32 %v1415_v47, %v2622_v46 }
 0x81e   : > { %1429 = vrot.lane.b32.xlu0 %v2792_v48, %s2322_s25 }
 0x81f   : > { %1431 = vrot.lane.b32.xlu1 %v2795_v49, %s2322_s25 }
 0x822   : > { %1433 = vrot.lane.b32.xlu0 %v1422_v42, %s2322_s25 }
 0x890   : > { %v1430_v50 = vpop.permute.xlu0 %1429 }
 0x891   : > { %1440 = vst.msk [vmem:[#allocation2] sm:$0xff] %vm2518_vm13, %v1430_v50  ;;  %v1432_v51 = vpop.permute.xlu1 %1431 }
 0x892   : > { %v1435_v52 = vsel %vm660_vm12, %v1430_v50, %v1432_v51 }
 0x893   : > { %1441 = vst.msk [vmem:[#allocation2 + $0x8] sm:$0xff] %vm678_vm14, %v1435_v52 }
 0x894   : > { %v1434_v45 = vpop.permute.xlu0 %1433 }
 0x895   : > { %v1436_v46 = vsel %vm660_vm12, %v1432_v51, %v1434_v45 }
 0x896   : > { %1442 = vst.msk [vmem:[#allocation2 + $0x10] sm:$0xff] %vm2532_vm10, %v1436_v46 }
 0x898   : > { %v1443_v53 = vld [vmem:[#allocation2] sm:$0xff] }
 0x899   : > { %v1446_v54 = vpack.c.bf16 %v1443_v53, %v1443_v53 }
 0x89a   : > { %v1444_v58 = vld [vmem:[#allocation2 + $0x8] sm:$0xff] }
 0x89b   : > { %1463 = vrot.lane.b32.xlu0 %v1446_v54, %s2337_s15  ;;  %v1452_v55 = vrot.slane %v1446_v54, 4  ;;  %v1447_v59 = vpack.c.bf16 %v1444_v58, %v1444_v58 }
 0x89d   : > { %1455 = vrot.lane.b32.xlu1 %v1452_v55, %s2338_s16  ;;  %v1445_v56 = vld [vmem:[#allocation2 + $0x10] sm:$0xff]  ;;  %v1453_v61 = vrot.slane %v1447_v59, 4 }
 0x89e   : > { %v1448_v57 = vpack.c.bf16 %v1445_v56, %v1445_v56 }
 0x89f   : > { %1479 = vrot.lane.b32.xlu0 %v1446_v54, %s2339_s17 }
 0x8a0   : > { %v1454_v60 = vrot.slane %v1448_v57, 4 }
 0x8a1   : > { %1467 = vrot.lane.b32.xlu1 %v1448_v57, %s2337_s15 }
 0x8a3   : > { %1495 = vrot.lane.b32.xlu0 %v1446_v54, %s2342_s22 }
 0x8a5   : > { %1471 = vrot.lane.b32.xlu1 %v1452_v55, %s2340_s20 }
 0x8a7   : > { %1465 = vrot.lane.b32.xlu0 %v1447_v59, %s2337_s15 }
 0x8a9   : > { %1483 = vrot.lane.b32.xlu1 %v1448_v57, %s2339_s17 }
 0x8ab   : > { %1481 = vrot.lane.b32.xlu0 %v1447_v59, %s2339_s17 }
 0x8ad   : > { %1487 = vrot.lane.b32.xlu1 %v1452_v55, %s2341_s21 }
 0x8af   : > { %1497 = vrot.lane.b32.xlu0 %v1447_v59, %s2342_s22 }
 0x8b1   : > { %1499 = vrot.lane.b32.xlu1 %v1448_v57, %s2342_s22 }
 0x8b3   : > { %1459 = vrot.lane.b32.xlu0 %v1454_v60, %s2338_s16 }
 0x8b5   : > { %1457 = vrot.lane.b32.xlu1 %v1453_v61, %s2338_s16 }
 0x8b7   : > { %1473 = vrot.lane.b32.xlu0 %v1453_v61, %s2340_s20 }
 0x8b9   : > { %1475 = vrot.lane.b32.xlu1 %v1454_v60, %s2340_s20 }
 0x8bb   : > { %1489 = vrot.lane.b32.xlu0 %v1453_v61, %s2341_s21 }
 0x8bd   : > { %1491 = vrot.lane.b32.xlu1 %v1454_v60, %s2341_s21 }
 0x8bf   : > { %1505 = vrot.lane.b32.xlu0 %v1453_v61, %s2343_s23 }
 0x8c1   : > { %1507 = vrot.lane.b32.xlu1 %v1454_v60, %s2343_s23 }
 0x8c3   : > { %1511 = vrot.lane.b32.xlu0 %v1446_v54, %s2346_s24 }
 0x8c5   : > { %1503 = vrot.lane.b32.xlu1 %v1452_v55, %s2343_s23 }
 0x8c7   : > { %1515 = vrot.lane.b32.xlu0 %v1448_v57, %s2346_s24 }
 0x8c9   : > { %1513 = vrot.lane.b32.xlu1 %v1447_v59, %s2346_s24 }
 0x8cd   : > { %1573 = vperm.xlu1 %2311, %v2131_v62  }
 0x90d   : > { %v1464_v63 = vpop.permute.xlu0 %1463 }
 0x90f   : > { %v1456_v1 = vpop.permute.xlu1 %1455 }
 0x911   : > { %v1480_v2 = vpop.permute.xlu0 %1479 }
 0x913   : > { %v1468_v3 = vpop.permute.xlu1 %1467 }
 0x915   : > { %v1496_v4 = vpop.permute.xlu0 %1495 }
 0x917   : > { %v1472_v5 = vpop.permute.xlu1 %1471 }
 0x919   : > { %v1466_v6 = vpop.permute.xlu0 %1465 }
 0x91a   : > { %v1470_v29 = vsel %vm441_vm1, %v1466_v6, %v1468_v3  ;;  %v1469_v32 = vsel %vm441_vm1, %v1464_v63, %v1466_v6 }
 0x91b   : > { %v1484_v9 = vpop.permute.xlu1 %1483 }
 0x91d   : > { %v1482_v10 = vpop.permute.xlu0 %1481 }
 0x91e   : > { %v1486_v38 = vsel %vm404_vm4, %v1482_v10, %v1484_v9  ;;  %v1485_v41 = vsel %vm404_vm4, %v1480_v2, %v1482_v10 }
 0x91f   : > { %v1488_v11 = vpop.permute.xlu1 %1487 }
 0x921   : > { %v1498_v12 = vpop.permute.xlu0 %1497 }
 0x922   : > { %v1501_v45 = vsel %vm477_vm7, %v1496_v4, %v1498_v12 }
 0x923   : > { %v1500_v13 = vpop.permute.xlu1 %1499 }
 0x924   : > { %v1502_v24 = vsel %vm477_vm7, %v1498_v12, %v1500_v13 }
 0x925   : > { %v1460_v15 = vpop.permute.xlu0 %1459 }
 0x926   : > { %v1529_v16 = vsel %vm498_vm15, %v1448_v57, %v1460_v15  ;;  %v2130_v57 = vld [vmem:[%s2983_s1 + $0x10] sm:$0xf] }
 0x927   : > { %2241 = vmatpush3.bf16.msra.mxu1 %v1529_v16  ;;  %v1458_v17 = vpop.permute.xlu1 %1457 }
 0x928   : > { %v1461_v18 = vsel %vm432_vm0, %v1456_v1, %v1458_v17  ;;  %v1462_v20 = vsel %vm432_vm0, %v1458_v17, %v1460_v15  ;;  %2242 = vmatprep.subr.bf16.mxu1 %v2320_v0 }
 0x929   : > { %v1474_v21 = vpop.permute.xlu0 %1473  ;;  %v1525_v25 = vsel %vm498_vm15, %v1447_v59, %v1462_v20  ;;  %v1521_v23 = vsel %vm498_vm15, %v1446_v54, %v1461_v18 }
 0x92a   : > { %1588 = vmatprep.subr.bf16.mxu0 %v1525_v25  ;;  %v1477_v26 = vsel %vm450_vm2, %v1472_v5, %v1474_v21 }
 0x92b   : > { %1589 = vmatpush1.bf16.msra.mxu0 %v1521_v23  ;;  %v1476_v27 = vpop.permute.xlu1 %1475  ;;  %v1533_v35 = vsel %vm498_vm15, %v1469_v32, %v1477_v26  ;;  %v2136_v32 = vld [vmem:[%s2984_s2 + $0x28] sm:$0xff] }
 0x92c   : > { %v1478_v30 = vsel %vm450_vm2, %v1474_v21, %v1476_v27  ;;  %v1541_v31 = vsel %vm498_vm15, %v1468_v3, %v1476_v27 }
 0x92d   : > { %v1490_v33 = vpop.permute.xlu0 %1489  ;;  %2243 = vmatpush3.bf16.msra.mxu1 %v1541_v31  ;;  %v1537_v34 = vsel %vm498_vm15, %v1470_v29, %v1478_v30  ;;  %v1934_v31 = vld [vmem:[%s2986_s4] sm:$0xff] }
 0x92e   : > { %1590 = vmatprep.subr.bf16.mxu0 %v1537_v34  ;;  %2244 = vmatprep.subr.bf16.mxu1 %v2320_v0  ;;  %v1493_v36 = vsel %vm468_vm5, %v1488_v11, %v1490_v33 }
 0x92f   : > { %1591 = vmatpush1.bf16.msra.mxu0 %v1533_v35  ;;  %v1492_v37 = vpop.permute.xlu1 %1491  ;;  %v1545_v43 = vsel %vm498_vm15, %v1485_v41, %v1493_v36 }
 0x930   : > { %v1494_v39 = vsel %vm468_vm5, %v1490_v33, %v1492_v37  ;;  %v1553_v40 = vsel %vm498_vm15, %v1484_v9, %v1492_v37 }
 0x931   : > { %v1506_v22 = vpop.permute.xlu0 %1505  ;;  %2245 = vmatpush3.bf16.msra.mxu1 %v1553_v40  ;;  %v1549_v42 = vsel %vm498_vm15, %v1486_v38, %v1494_v39 }
 0x932   : > { %1592 = vmatprep.subr.bf16.mxu0 %v1549_v42  ;;  %2246 = vmatprep.subr.bf16.mxu1 %v2320_v0 }
 0x933   : > { %1593 = vmatpush1.bf16.msra.mxu0 %v1545_v43  ;;  %v1508_v19 = vpop.permute.xlu1 %1507 }
 0x934   : > { %v1510_v44 = vsel %vm3007_vm6, %v1506_v22, %v1508_v19  ;;  %v1565_v47 = vsel %vm498_vm15, %v1500_v13, %v1508_v19  ;;  %vm3009_vm6 = vcmask 588800  }
 0x935   : > { %v1512_v50 = vpop.permute.xlu0 %1511  ;;  %2247 = vmatpush3.bf16.msra.mxu1 %v1565_v47  ;;  %v1561_v51 = vsel %vm498_vm15, %v1502_v24, %v1510_v44 }
 0x936   : > { %1594 = vmatprep.subr.bf16.mxu0 %v1561_v51  ;;  %2248 = vmatprep.subr.bf16.mxu1 %v2320_v0 }
 0x937   : > { %v1504_v52 = vpop.permute.xlu1 %1503 }
 0x938   : > { %v1509_v46 = vsel %vm3008_vm3, %v1504_v52, %v1506_v22  ;;  %vm3010_vm3 = vmmov %vm3009_vm6 }
 0x939   : > { %v1516_v53 = vpop.permute.xlu0 %1515  ;;  %v1557_v54 = vsel %vm498_vm15, %v1501_v45, %v1509_v46 }
 0x93a   : > { %v1586_v55 = vsel %vm498_vm15, %v1516_v53, 0  ;;  %1595 = vmatpush1.bf16.msra.mxu0 %v1557_v54 }
 0x93b   : > { %2249 = vmatpush3.bf16.msra.mxu1 %v1586_v55  ;;  %v1514_v56 = vpop.permute.xlu1 %1513 }
 0x93c   : > { %v1517_v58 = vsel %vm495_vm8, %v1512_v50, %v1514_v56  ;;  %v1518_v59 = vsel %vm495_vm8, %v1514_v56, %v1516_v53  ;;  %2254 = vmatprep.subr.bf16.mxu1 %v2320_v0 }
 0x93d   : > { %v1580_v60 = vsel %vm498_vm15, %v1517_v58, 0  ;;  %2132 = vmatprep.subr.msk.bf16.mxu0 %vm498_vm15, %v1518_v59 }
 0x93e   : > { %1597 = vmatpush1.bf16.msra.mxu0 %v1580_v60  ;;  %2251 = vmatmul.mubr.msk.bf16.vlgmr.msra.gmra.mrb[16].mxu1 %vm3009_vm6, %v2130_v57 }
 0x93f   : > { %2264 = vmatprep.mubr.msk.bf16.mxu1 %vm2997_vm11, %v2320_v0 }
 0x941   : > { %2133 = vmatmul.mubr.msk.bf16.vlgmr.msra.gmra.mrb[16].mxu0 %vm3010_vm3, %v2130_v57 }
 0x942   : > { %1866 = vmatprep.mubr.bf16.mxu0 %v2344_v28 }
 0x94c   : > { %v1574_v63 = vpop.permute.xlu1 %1573 }
 0xa11   : > { %v1663_v61 = vpop.f32.mrb[16].mxu1 }
 0xa12   : > { %v2252_v62 = vpop.f32.mrb[17].mxu1  ;;  %v1664_v10 = vadd.f32 %v1663_v61, %v1574_v63 }
 0xa13   : > { %v1666_v1 = vpop.f32.mrb[18].mxu1 }
 0xa14   : > { %v1622_v2 = vpop.f32.mrb[16].mxu0  ;;  %v2253_v3 = vpop.f32.mrb[19].mxu1  ;;  %v1671_v15 = vmax.f32 %v1664_v10, 0.0 }
 0xa15   : > { %v1623_v4 = vadd.f32 %v1622_v2, %v1574_v63  ;;  %v1624_v5 = vpop.f32.mrb[17].mxu0 }
 0xa16   : > { %v1625_v6 = vadd.f32 %v1624_v5, %v1574_v63  ;;  %v1626_v9 = vpop.f32.mrb[18].mxu0 }
 0xa17   : > { %v1669_v11 = vmax.f32 %v1623_v4, 0.0  ;;  %v1627_v12 = vpop.f32.mrb[19].mxu0 }
 0xa18   : > { %v1670_v13 = vmax.f32 %v1625_v6, 0.0 }
 0xa19   : > { %1675 = vrot.lane.b32.xlu0 %v1669_v11, %s2322_s25 }
 0xa1a   : > { %1677 = vrot.lane.b32.xlu1 %v1670_v13, %s2322_s25 }
 0xa1d   : > { %1679 = vrot.lane.b32.xlu0 %v1671_v15, %s2322_s25 }
 0xa8b   : > { %v1676_v16 = vpop.permute.xlu0 %1675 }
 0xa8c   : > { %1686 = vst.msk [vmem:[#allocation2] sm:$0xff] %vm2518_vm13, %v1676_v16  ;;  %v1678_v17 = vpop.permute.xlu1 %1677 }
 0xa8d   : > { %v1681_v18 = vsel %vm660_vm12, %v1676_v16, %v1678_v17 }
 0xa8e   : > { %1687 = vst.msk [vmem:[#allocation2 + $0x8] sm:$0xff] %vm678_vm14, %v1681_v18 }
 0xa8f   : > { %v1680_v20 = vpop.permute.xlu0 %1679 }
 0xa90   : > { %v1682_v21 = vsel %vm660_vm12, %v1678_v17, %v1680_v20 }
 0xa91   : > { %1688 = vst.msk [vmem:[#allocation2 + $0x10] sm:$0xff] %vm2532_vm10, %v1682_v21 }
 0xa93   : > { %v1689_v25 = vld [vmem:[#allocation2] sm:$0xff] }
 0xa94   : > { %v1692_v23 = vpack.c.bf16 %v1689_v25, %v1689_v25 }
 0xa95   : > { %v1690_v8 = vld [vmem:[#allocation2 + $0x8] sm:$0xff] }
 0xa96   : > { %1709 = vrot.lane.b32.xlu0 %v1692_v23, %s2337_s15  ;;  %v1698_v26 = vrot.slane %v1692_v23, 4  ;;  %v1693_v14 = vpack.c.bf16 %v1690_v8, %v1690_v8 }
 0xa98   : > { %1701 = vrot.lane.b32.xlu1 %v1698_v26, %s2338_s16  ;;  %v1691_v7 = vld [vmem:[#allocation2 + $0x10] sm:$0xff]  ;;  %v1699_v30 = vrot.slane %v1693_v14, 4 }
 0xa99   : > { %v1694_v27 = vpack.c.bf16 %v1691_v7, %v1691_v7 }
 0xa9a   : > { %1725 = vrot.lane.b32.xlu0 %v1692_v23, %s2339_s17 }
 0xa9b   : > { %v1700_v29 = vrot.slane %v1694_v27, 4 }
 0xa9c   : > { %1713 = vrot.lane.b32.xlu1 %v1694_v27, %s2337_s15 }
 0xa9e   : > { %1741 = vrot.lane.b32.xlu0 %v1692_v23, %s2342_s22 }
 0xaa0   : > { %1717 = vrot.lane.b32.xlu1 %v1698_v26, %s2340_s20 }
 0xaa2   : > { %1711 = vrot.lane.b32.xlu0 %v1693_v14, %s2337_s15 }
 0xaa4   : > { %1729 = vrot.lane.b32.xlu1 %v1694_v27, %s2339_s17 }
 0xaa6   : > { %1727 = vrot.lane.b32.xlu0 %v1693_v14, %s2339_s17 }
 0xaa8   : > { %1733 = vrot.lane.b32.xlu1 %v1698_v26, %s2341_s21 }
 0xaaa   : > { %1743 = vrot.lane.b32.xlu0 %v1693_v14, %s2342_s22 }
 0xaac   : > { %1745 = vrot.lane.b32.xlu1 %v1694_v27, %s2342_s22 }
 0xaae   : > { %1705 = vrot.lane.b32.xlu0 %v1700_v29, %s2338_s16 }
 0xab0   : > { %1703 = vrot.lane.b32.xlu1 %v1699_v30, %s2338_s16 }
 0xab2   : > { %1719 = vrot.lane.b32.xlu0 %v1699_v30, %s2340_s20 }
 0xab4   : > { %1721 = vrot.lane.b32.xlu1 %v1700_v29, %s2340_s20 }
 0xab6   : > { %1735 = vrot.lane.b32.xlu0 %v1699_v30, %s2341_s21 }
 0xab8   : > { %1737 = vrot.lane.b32.xlu1 %v1700_v29, %s2341_s21 }
 0xaba   : > { %1751 = vrot.lane.b32.xlu0 %v1699_v30, %s2343_s23 }
 0xabc   : > { %1753 = vrot.lane.b32.xlu1 %v1700_v29, %s2343_s23 }
 0xabe   : > { %1757 = vrot.lane.b32.xlu0 %v1692_v23, %s2346_s24 }
 0xac0   : > { %1749 = vrot.lane.b32.xlu1 %v1698_v26, %s2343_s23  ;;  %v2135_v26 = vld [vmem:[%s2983_s1 + $0x14] sm:$0xf] }
 0xac2   : > { %1761 = vrot.lane.b32.xlu0 %v1694_v27, %s2346_s24 }
 0xac4   : > { %1759 = vrot.lane.b32.xlu1 %v1693_v14, %s2346_s24  ;;  %s2274_s24 = smul.u32 24, %s3016_s19 }
 0xac6   : > { %1937 = vperm.xlu0 %2310, %v1934_v31   ;;  %s224_s9 = scalar_lea.vmem %s2987_s5, %s2274_s24 }
 0xac8   : > { %1819 = vperm.xlu1 %2311, %v2136_v32  }
 0xb08   : > { %v1710_v33 = vpop.permute.xlu0 %1709 }
 0xb0a   : > { %v1702_v34 = vpop.permute.xlu1 %1701 }
 0xb0c   : > { %v1726_v35 = vpop.permute.xlu0 %1725 }
 0xb0e   : > { %v1714_v36 = vpop.permute.xlu1 %1713 }
 0xb10   : > { %v1742_v37 = vpop.permute.xlu0 %1741 }
 0xb12   : > { %v1718_v38 = vpop.permute.xlu1 %1717 }
 0xb14   : > { %v1712_v39 = vpop.permute.xlu0 %1711 }
 0xb15   : > { %v1716_v54 = vsel %vm441_vm1, %v1712_v39, %v1714_v36  ;;  %v1715_v57 = vsel %vm441_vm1, %v1710_v33, %v1712_v39 }
 0xb16   : > { %v1730_v40 = vpop.permute.xlu1 %1729 }
 0xb18   : > { %v1728_v41 = vpop.permute.xlu0 %1727 }
 0xb19   : > { %v1732_v63 = vsel %vm404_vm4, %v1728_v41, %v1730_v40  ;;  %v1731_v3 = vsel %vm404_vm4, %v1726_v35, %v1728_v41 }
 0xb1a   : > { %v1734_v22 = vpop.permute.xlu1 %1733 }
 0xb1c   : > { %v1744_v42 = vpop.permute.xlu0 %1743 }
 0xb1d   : > { %v1747_v17 = vsel %vm477_vm7, %v1742_v37, %v1744_v42 }
 0xb1e   : > { %v1746_v43 = vpop.permute.xlu1 %1745 }
 0xb1f   : > { %v1748_v10 = vsel %vm477_vm7, %v1744_v42, %v1746_v43 }
 0xb20   : > { %v1706_v19 = vpop.permute.xlu0 %1705 }
 0xb21   : > { %v1775_v24 = vsel %vm498_vm15, %v1694_v27, %v1706_v19 }
 0xb22   : > { %v1704_v44 = vpop.permute.xlu1 %1703  ;;  %2255 = vmatpush3.bf16.msra.mxu1 %v1775_v24 }
 0xb23   : > { %v1707_v47 = vsel %vm432_vm0, %v1702_v34, %v1704_v44  ;;  %v1708_v50 = vsel %vm432_vm0, %v1704_v44, %v1706_v19  ;;  %2256 = vmatprep.subr.bf16.mxu1 %v2320_v0  ;;  %vm3011_vm0 = vcmask 744448  }
 0xb24   : > { %v1720_v51 = vpop.permute.xlu0 %1719  ;;  %v1771_v52 = vsel %vm498_vm15, %v1693_v14, %v1708_v50  ;;  %v1767_v45 = vsel %vm498_vm15, %v1692_v23, %v1707_v47  ;;  %vm3012_vm1 = vmmov %vm3011_vm0  ;;  %v1933_v50 = vld [vmem:[%s2985_s3] sm:$0xf] }
 0xb25   : > { %1834 = vmatprep.subr.bf16.mxu0 %v1771_v52  ;;  %v1723_v46 = vsel %vm450_vm2, %v1718_v38, %v1720_v51 }
 0xb26   : > { %v1722_v53 = vpop.permute.xlu1 %1721  ;;  %1835 = vmatpush1.bf16.msra.mxu0 %v1767_v45  ;;  %v1779_v60 = vsel %vm498_vm15, %v1715_v57, %v1723_v46 }
 0xb27   : > { %v1724_v55 = vsel %vm450_vm2, %v1720_v51, %v1722_v53  ;;  %v1787_v56 = vsel %vm498_vm15, %v1714_v36, %v1722_v53  ;;  %vm3013_vm2 = vmmov %vm3010_vm3  ;;  %v1920_v36 = vld [vmem:[#allocation3 + $0x10] sm:$0xff] }
 0xb28   : > { %2257 = vmatpush3.bf16.msra.mxu1 %v1787_v56  ;;  %v1736_v58 = vpop.permute.xlu0 %1735  ;;  %v1783_v59 = vsel %vm498_vm15, %v1716_v54, %v1724_v55  ;;  %vm3014_vm4 = vmmov %vm3013_vm2 }
 0xb29   : > { %1836 = vmatprep.subr.bf16.mxu0 %v1783_v59  ;;  %2258 = vmatprep.subr.bf16.mxu1 %v2320_v0  ;;  %v1739_v61 = vsel %vm468_vm5, %v1734_v22, %v1736_v58 }
 0xb2a   : > { %v1738_v62 = vpop.permute.xlu1 %1737  ;;  %1837 = vmatpush1.bf16.msra.mxu0 %v1779_v60  ;;  %v1791_v6 = vsel %vm498_vm15, %v1731_v3, %v1739_v61 }
 0xb2b   : > { %v1740_v1 = vsel %vm468_vm5, %v1736_v58, %v1738_v62  ;;  %v1799_v2 = vsel %vm498_vm15, %v1730_v40, %v1738_v62  ;;  %vm1940_vm5 = vcmask 64512  }
 0xb2c   : > { %2259 = vmatpush3.bf16.msra.mxu1 %v1799_v2  ;;  %v1752_v4 = vpop.permute.xlu0 %1751  ;;  %v1795_v5 = vsel %vm498_vm15, %v1732_v63, %v1740_v1 }
 0xb2d   : > { %1838 = vmatprep.subr.bf16.mxu0 %v1795_v5  ;;  %2260 = vmatprep.subr.bf16.mxu1 %v2320_v0 }
 0xb2e   : > { %v1754_v9 = vpop.permute.xlu1 %1753  ;;  %1839 = vmatpush1.bf16.msra.mxu0 %v1791_v6 }
 0xb2f   : > { %v1756_v11 = vsel %vm3011_vm0, %v1752_v4, %v1754_v9  ;;  %v1811_v12 = vsel %vm498_vm15, %v1746_v43, %v1754_v9 }
 0xb30   : > { %2261 = vmatpush3.bf16.msra.mxu1 %v1811_v12  ;;  %v1758_v13 = vpop.permute.xlu0 %1757  ;;  %v1807_v15 = vsel %vm498_vm15, %v1748_v10, %v1756_v11 }
 0xb31   : > { %1840 = vmatprep.subr.bf16.mxu0 %v1807_v15  ;;  %2262 = vmatprep.subr.bf16.mxu1 %v2320_v0 }
 0xb32   : > { %v1750_v16 = vpop.permute.xlu1 %1749 }
 0xb33   : > { %v1755_v18 = vsel %vm3012_vm1, %v1750_v16, %v1752_v4 }
 0xb34   : > { %v1762_v20 = vpop.permute.xlu0 %1761  ;;  %v1803_v21 = vsel %vm498_vm15, %v1747_v17, %v1755_v18 }
 0xb35   : > { %v1832_v25 = vsel %vm498_vm15, %v1762_v20, 0  ;;  %1841 = vmatpush1.bf16.msra.mxu0 %v1803_v21 }
 0xb36   : > { %v1760_v23 = vpop.permute.xlu1 %1759  ;;  %2263 = vmatpush3.bf16.msra.mxu1 %v1832_v25 }
 0xb37   : > { %v1763_v7 = vsel %vm495_vm8, %v1758_v13, %v1760_v23  ;;  %v1764_v27 = vsel %vm495_vm8, %v1760_v23, %v1762_v20  ;;  %2268 = vmatprep.subr.bf16.mxu1 %v2320_v0 }
 0xb38   : > { %v1826_v8 = vsel %vm498_vm15, %v1763_v7, 0  ;;  %2137 = vmatprep.subr.msk.bf16.mxu0 %vm498_vm15, %v1764_v27 }
 0xb39   : > { %1843 = vmatpush1.bf16.msra.mxu0 %v1826_v8  ;;  %2265 = vmatmul.mubr.msk.bf16.vlgmr.msra.gmra.mrb[20].mxu1 %vm3013_vm2, %v2135_v26 }
 0xb3a   : > { %2270 = vmatprep.mubr.msk.bf16.mxu1 %vm2997_vm11, %v2320_v0 }
 0xb3c   : > { %2138 = vmatmul.mubr.msk.bf16.vlgmr.msra.gmra.mrb[20].mxu0 %vm3014_vm4, %v2135_v26 }
 0xb3d   : > { %1985 = vmatprep.mubr.bf16.mxu0 %v2344_v28 }
 0xb47   : > { %v1820_v14 = vpop.permute.xlu1 %1819 }
 0xc0c   : > { %v1909_v29 = vpop.f32.mrb[20].mxu1 }
 0xc0d   : > { %v1910_v30 = vadd.f32 %v1909_v29, %v1820_v14  ;;  %v2266_v31 = vpop.f32.mrb[21].mxu1 }
 0xc0e   : > { %v1912_v32 = vpop.f32.mrb[22].mxu1 }
 0xc0f   : > { %v1917_v33 = vmax.f32 %v1910_v30, 0.0  ;;  %v1868_v34 = vpop.f32.mrb[20].mxu0  ;;  %v2267_v35 = vpop.f32.mrb[23].mxu1 }
 0xc10   : > { %v1869_v37 = vadd.f32 %v1868_v34, %v1820_v14  ;;  %v1870_v38 = vpop.f32.mrb[21].mxu0 }
 0xc11   : > { %v1923_v39 = vadd.f32 %v1920_v36, %v1917_v33  ;;  %v1871_v40 = vadd.f32 %v1870_v38, %v1820_v14  ;;  %v1872_v41 = vpop.f32.mrb[22].mxu0 }
 0xc12   : > { %v1915_v22 = vmax.f32 %v1869_v37, 0.0  ;;  %v1873_v0 = vpop.f32.mrb[23].mxu0 }
 0xc13   : > { %1926 = vst.msk [vmem:[#allocation3 + $0x10] sm:$0xff] %vm412_vm9, %v1923_v39  ;;  %v1916_v42 = vmax.f32 %v1871_v40, 0.0 }
 0xc14   : > { %v1921_v28 = vadd.f32 %v1915_v22, %v2792_v48  ;;  %v1938_v48 = vpop.permute.xlu0 %1937 }
 0xc15   : > { %v1922_v43 = vadd.f32 %v1916_v42, %v2795_v49 }
 0xc16   : > { %v1930_v19 = vpack.c.bf16 %v1921_v28, %v1921_v28 }
 0xc17   : > { %v1931_v24 = vpack.c.bf16 %v1922_v43, %v1922_v43 }
 0xc18   : > { %v1945_v44 = vsel %vm498_vm15, %v1930_v19, 0 }
 0xc19   : > { %2140 = vmatprep.subr.msk.bf16.mxu0 %vm498_vm15, %v1931_v24 }
 0xc1a   : > { %v1929_v47 = vld [vmem:[#allocation3 + $0x10] sm:$0xff]  ;;  %1954 = vmatpush1.bf16.msra.mxu0 %v1945_v44 }
 0xc1b   : > { %v1932_v51 = vpack.c.bf16 %v1929_v47, %v1929_v47 }
 0xc1d   : > { %v1951_v52 = vsel %vm498_vm15, %v1932_v51, 0  ;;  %2141 = vmatmul.mubr.msk.bf16.vlgmr.msra.gmra.mrb[24].mxu0 %vm1940_vm5, %v1933_v50 }
 0xc1e   : > { %2269 = vmatpush3.bf16.msra.mxu1 %v1951_v52 }
 0xc21   : > { %2271 = vmatmul.mubr.msk.bf16.vlgmr.msra.gmra.mrb[24].mxu1 %vm1940_vm5, %v1933_v50 }
 0xcf0   : > { %v1987_v49 = vpop.f32.mrb[24].mxu0 }
 0xcf1   : > { %v1988_v45 = vadd.f32 %v1987_v49, %v1938_v48  ;;  %v1989_v46 = vpop.f32.mrb[25].mxu0 }
 0xcf2   : > { %v1990_v53 = vadd.f32 %v1989_v46, %v1938_v48  ;;  %v1991_v54 = vpop.f32.mrb[26].mxu0 }
 0xcf3   : > { %2034 = vst [vmem:[%s224_s9] sm:$0xff] %v1988_v45  ;;  %v1992_v55 = vpop.f32.mrb[27].mxu0 }
 0xcf4   : > { %v2028_v56 = vpop.f32.mrb[24].mxu1  ;;  %2035 = vst [vmem:[%s224_s9 + $0x8] sm:$0xff] %v1990_v53 }
 0xcf5   : > { %v2029_v57 = vadd.f32 %v2028_v56, %v1938_v48  ;;  %v2272_v58 = vpop.f32.mrb[25].mxu1 }
 0xcf6   : > { %v2031_v59 = vpop.f32.mrb[26].mxu1 }
 0xcf7   : > { %2036 = vst [vmem:[%s224_s9 + $0x10] sm:$0xff] %v2029_v57  ;;  %v2273_v60 = vpop.f32.mrb[27].mxu1 }
 0xcf8 PF: > { %s15_s18 = sadd.s32 1, %s2318_s18  }
 0xcf9   : > { %p12_p4 = scmp.ge.s32.totalorder %s15_s18, 4  }
 0xcfb   :  { %14 = sbr.rel (!%p12_p4) target bundleno = 1 (0x1), region = 80 }

</bundles_post_ra>
